<compile_context>
chip_gen: v7x
topology: tpu7x:2x2x1
jax: 0.10.0
libtpu: 0.0.40
codegen_flags: <defaults>
</compile_context>

<pallas_src>
import functools

import jax
import jax.numpy as jnp
from jax.experimental import pallas as pl
from jax.experimental.pallas import tpu as pltpu

LOWER_BOUND = 1e-4   # GreaterThan(0.0001) constraint lower bound
LENGTHSCALE = 1.5    # RBF lengthscale of the synthetic noise model


def _round_up(n, m):
    return ((n + m - 1) // m) * m


def _hetero_noise_kernel(x_ref, zs_ref, z2h_ref, alpha_ref, csq_ref, o_ref):
    """Fused GP-posterior-mean noise model + GreaterThan(1e-4) transform for one N-tile."""
    x = x_ref[...]                                            # (tn, D), streamed natively
    # Scaled cross term (z / ls^2) @ x^T on the MXU (transposed-RHS feed; f32 parity pinned).
    xz = jax.lax.dot_general(
        zs_ref[...], x, (((1,), (1,)), ((), ())),
        preferred_element_type=jnp.float32,
        precision=jax.lax.Precision.HIGHEST)                  # (M, tn)
    # -0.5/ls^2 * ||x||^2 directly in lane-dense (1, tn) layout via a tiny MXU dot
    # (avoids a wrapper-side pass over x and any in-kernel transpose).
    x2h = jax.lax.dot_general(
        csq_ref[...], x * x, (((1,), (1,)), ((), ())),
        preferred_element_type=jnp.float32,
        precision=jax.lax.Precision.HIGHEST)                  # (1, tn)
    # exponent = -0.5 * ||x - z||^2 / ls^2 (z-only term prefolded); clamp sqdist >= 0.
    expo = jnp.minimum(xz + x2h + z2h_ref[...], 0.0)          # (M, tn), VPU
    k = jnp.exp(expo)                                         # (M, tn), EUP -- binding unit
    # mean(x) = K(x, Z) @ alpha as VPU multiply + XLU sublane reduce (exact f32, MXU stays free).
    mean = jnp.sum(k * alpha_ref[...], axis=0, keepdims=True)  # (1, tn)
    # GreaterThan(1e-4).transform(mean) = softplus(mean) + 1e-4 (stable, Mosaic-friendly form).
    softplus = jnp.maximum(mean, 0.0) + jnp.log(1.0 + jnp.exp(-jnp.abs(mean)))
    o_ref[...] = softplus + LOWER_BOUND


@functools.partial(jax.jit, static_argnames=("tile_n",))
def _hetero_noise_pallas(x, z, alpha, *, tile_n):
    N, D = x.shape
    M, _ = z.shape

    inv_ls2 = 1.0 / (LENGTHSCALE * LENGTHSCALE)

    # Cheap z-side prefolds (one-shot, tiny arrays); x is NOT touched in the wrapper.
    x = x.astype(jnp.float32)                                             # (N, D)
    zs = (inv_ls2 * z).astype(jnp.float32)                                # (M, D), scale folded
    z2h = (-0.5 * inv_ls2) * jnp.sum(
        z.astype(jnp.float32) ** 2, axis=-1, keepdims=True)               # (M, 1)
    alpha = alpha.astype(jnp.float32)                                     # (M, 1)
    csq = jnp.full((1, D), -0.5 * inv_ls2, dtype=jnp.float32)             # (1, D)

    # Largest lane-dense tile <= tile_n that still leaves >= ~4 grid steps, so the "parallel"
    # axis spans both TensorCores on v7x instead of collapsing into a single tile.
    tn = min(tile_n, max(128, _round_up(-(-N // 4), 128)))
    grid_n = -(-N // tn)   # cdiv; trailing partial block is handled via masked stores (no pad)

    out = pl.pallas_call(
        _hetero_noise_kernel,
        out_shape=jax.ShapeDtypeStruct((1, N), jnp.float32),
        grid=(grid_n,),
        in_specs=[
            pl.BlockSpec((tn, D), lambda i: (i, 0)),   # x tile   (streamed per grid step)
            pl.BlockSpec((M, D), lambda i: (0, 0)),    # z scaled (VMEM-resident)
            pl.BlockSpec((M, 1), lambda i: (0, 0)),    # z2h      (VMEM-resident)
            pl.BlockSpec((M, 1), lambda i: (0, 0)),    # alpha    (VMEM-resident)
            pl.BlockSpec((1, D), lambda i: (0, 0)),    # -0.5/ls^2 row for the ||x||^2 dot
        ],
        out_specs=pl.BlockSpec((1, tn), lambda i: (0, i)),
        compiler_params=pltpu.CompilerParams(
            dimension_semantics=("parallel",),
        ),
    )(x, zs, z2h, alpha, csq)

    return out[0]


def heteroskedastic_noise(x, z, alpha, noise=None, noise_indices=None, tile_n=4096):
    """Forward of HeteroskedasticNoise. Returns the diagonal of the DiagLinearOperator.

    If `noise` is given, it is returned as-is (DiagLinearOperator(noise) branch).
    """
    # TODO(synk): the arbitrary user-supplied GP `noise_model` (and its eval()/train() toggling)
    # has no Pallas equivalent; it is represented by a fixed RBF posterior-mean predictor.
    # TODO(synk): DiagLinearOperator is a lazy wrapper; we return its diagonal vector.
    if noise is not None:
        return noise
    noise_diag = _hetero_noise_pallas(x, z, alpha, tile_n=tile_n)
    if noise_indices is not None:
        # mean[..., noise_indices] selection; the elementwise constraint transform commutes
        # with the gather, so selecting after the kernel is equivalent.
        noise_diag = noise_diag[noise_indices]
    return noise_diag


if __name__ == "__main__":
    key = jax.random.PRNGKey(0)
    kx, kz, ka = jax.random.split(key, 3)

    # Small shapes consistent with a heteroskedastic-noise GP model.  N is not a multiple of
    # 128 (exercises the masked partial trailing block) and tile_n=128 gives a 2-step grid.
    N, D, M = 200, 32, 64
    x = jax.random.normal(kx, (N, D), dtype=jnp.float32)              # test inputs
    z = jax.random.normal(kz, (M, D), dtype=jnp.float32)              # inducing points
    alpha = 0.1 * jax.random.normal(ka, (M, 1), dtype=jnp.float32)    # posterior-mean weights

    noise_diag = heteroskedastic_noise(x, z, alpha, tile_n=128)
    noise_diag = jax.block_until_ready(noise_diag)

    # Pure-JAX reference of the same semantics (matmul pinned to HIGHEST for f32 parity).
    xz_ref = jax.lax.dot_general(x, z, (((1,), (1,)), ((), ())),
                                 precision=jax.lax.Precision.HIGHEST)          # (N, M)
    sq = (jnp.sum(x * x, -1, keepdims=True) + jnp.sum(z * z, -1)[None, :]
          - 2.0 * xz_ref)
    sq = jnp.maximum(sq, 0.0)
    K = jnp.exp(-0.5 * sq / LENGTHSCALE ** 2)                                   # (N, M)
    mean_ref = jnp.sum(K * alpha[:, 0][None, :], axis=-1)
    noise_ref = jax.nn.softplus(mean_ref) + LOWER_BOUND

    assert noise_diag.shape == (N,)
    assert bool(jnp.all(noise_diag > 0.0))
    assert bool(jnp.allclose(noise_diag, noise_ref, rtol=2e-4, atol=1e-6))

    # `noise=` passthrough branch (DiagLinearOperator(noise)).
    passthrough = heteroskedastic_noise(x, z, alpha, noise=noise_ref)
    assert bool(jnp.allclose(passthrough, noise_ref))

    # noise_indices selection branch.
    idx = jnp.array([0, 3, 7, 11, 150], dtype=jnp.int32)
    sel = heteroskedastic_noise(x, z, alpha, noise_indices=idx, tile_n=128)
    assert bool(jnp.allclose(sel, noise_ref[idx], rtol=2e-4, atol=1e-6))

    print("KERNEL_OK")
</pallas_src>

<mosaic_0001>
module attributes {stable_mosaic.version = 11 : i64} {
  func.func @_hetero_noise_kernel(%arg0: i32, %arg1: memref<128x32xf32, #tpu.memory_space<vmem>>, %arg2: memref<64x32xf32, #tpu.memory_space<vmem>>, %arg3: memref<64x1xf32, #tpu.memory_space<vmem>>, %arg4: memref<64x1xf32, #tpu.memory_space<vmem>>, %arg5: memref<1x32xf32, #tpu.memory_space<vmem>>, %arg6: memref<1x128xf32, #tpu.memory_space<vmem>>) attributes {dimension_semantics = [#tpu.dimension_semantics<parallel>], iteration_bounds = array<i64: 2>, scalar_prefetch = 0 : i64, scratch_operands = 0 : i64, tpu.core_type = #tpu.core_type<tc>, window_params = [{transform_indices = @transform_0, window_bounds = array<i64: 128, 32>}, {pipeline_mode = #tpu.pipeline_mode<synchronous>, transform_indices = @transform_1, window_bounds = array<i64: 64, 32>}, {pipeline_mode = #tpu.pipeline_mode<synchronous>, transform_indices = @transform_2, window_bounds = array<i64: 64, 1>}, {pipeline_mode = #tpu.pipeline_mode<synchronous>, transform_indices = @transform_3, window_bounds = array<i64: 64, 1>}, {pipeline_mode = #tpu.pipeline_mode<synchronous>, transform_indices = @transform_4, window_bounds = array<i64: 1, 32>}, {transform_indices = @transform_5, window_bounds = array<i64: 1, 128>}]} {
    %c0 = arith.constant 0 : index
    %c0_0 = arith.constant 0 : index
    %0 = vector.load %arg1[%c0, %c0_0] : memref<128x32xf32, #tpu.memory_space<vmem>>, vector<128x32xf32>
    %c0_1 = arith.constant 0 : index
    %c0_2 = arith.constant 0 : index
    %1 = vector.load %arg2[%c0_1, %c0_2] : memref<64x32xf32, #tpu.memory_space<vmem>>, vector<64x32xf32>
    %cst = arith.constant dense<0.000000e+00> : vector<64x128xf32>
    %2 = tpu.matmul %1, %0, %cst {dimension_numbers = #tpu.dot_dimension_numbers<[1], [1], [0], [0], [0, 0, 1, 0], [], []>, precision = #tpu.contract_precision<fp32>} : vector<64x32xf32>, vector<128x32xf32>, vector<64x128xf32> -> vector<64x128xf32>
    %c0_3 = arith.constant 0 : index
    %c0_4 = arith.constant 0 : index
    %3 = vector.load %arg5[%c0_3, %c0_4] : memref<1x32xf32, #tpu.memory_space<vmem>>, vector<1x32xf32>
    %4 = arith.mulf %0, %0 : vector<128x32xf32>
    %cst_5 = arith.constant dense<0.000000e+00> : vector<1x128xf32>
    %5 = tpu.matmul %3, %4, %cst_5 {dimension_numbers = #tpu.dot_dimension_numbers<[1], [1], [0], [0], [0, 0, 1, 0], [], []>, precision = #tpu.contract_precision<fp32>} : vector<1x32xf32>, vector<128x32xf32>, vector<1x128xf32> -> vector<1x128xf32>
    %6 = vector.broadcast %5 : vector<1x128xf32> to vector<64x128xf32>
    %7 = arith.addf %2, %6 : vector<64x128xf32>
    %c0_6 = arith.constant 0 : index
    %c0_7 = arith.constant 0 : index
    %8 = vector.load %arg3[%c0_6, %c0_7] : memref<64x1xf32, #tpu.memory_space<vmem>>, vector<64x1xf32>
    %9 = vector.broadcast %8 : vector<64x1xf32> to vector<64x128xf32>
    %10 = arith.addf %7, %9 : vector<64x128xf32>
    %cst_8 = arith.constant 0.000000e+00 : f32
    %11 = vector.broadcast %cst_8 : f32 to vector<64x128xf32>
    %12 = arith.minimumf %10, %11 : vector<64x128xf32>
    %13 = math.exp %12 : vector<64x128xf32>
    %c0_9 = arith.constant 0 : index
    %c0_10 = arith.constant 0 : index
    %14 = vector.load %arg4[%c0_9, %c0_10] : memref<64x1xf32, #tpu.memory_space<vmem>>, vector<64x1xf32>
    %15 = vector.broadcast %14 : vector<64x1xf32> to vector<64x128xf32>
    %16 = arith.mulf %13, %15 : vector<64x128xf32>
    %cst_11 = arith.constant dense<0.000000e+00> : vector<128xf32>
    %17 = vector.multi_reduction <add>, %16, %cst_11 [0] : vector<64x128xf32> to vector<128xf32>
    %18 = vector.shape_cast %17 : vector<128xf32> to vector<1x128xf32>
    %cst_12 = arith.constant 0.000000e+00 : f32
    %19 = vector.broadcast %cst_12 : f32 to vector<1x128xf32>
    %20 = arith.maximumf %18, %19 : vector<1x128xf32>
    %21 = math.absf %18 : vector<1x128xf32>
    %cst_13 = arith.constant 0.000000e+00 : f32
    %22 = vector.broadcast %cst_13 : f32 to vector<1x128xf32>
    %23 = arith.subf %22, %21 : vector<1x128xf32>
    %24 = math.exp %23 : vector<1x128xf32>
    %cst_14 = arith.constant 1.000000e+00 : f32
    %25 = vector.broadcast %cst_14 : f32 to vector<1x128xf32>
    %26 = arith.addf %25, %24 : vector<1x128xf32>
    %27 = math.log %26 : vector<1x128xf32>
    %28 = arith.addf %20, %27 : vector<1x128xf32>
    %cst_15 = arith.constant 9.99999974E-5 : f32
    %29 = vector.broadcast %cst_15 : f32 to vector<1x128xf32>
    %30 = arith.addf %28, %29 : vector<1x128xf32>
    %c0_16 = arith.constant 0 : index
    %c0_17 = arith.constant 0 : index
    %31 = vector.load %arg6[%c0_16, %c0_17] : memref<1x128xf32, #tpu.memory_space<vmem>>, vector<1x128xf32>
    tpu.vector_store %arg6[%c0_16, %c0_17], %30 {strides = array<i32>} : memref<1x128xf32, #tpu.memory_space<vmem>>, vector<1x128xf32>,
    return
  }
  func.func @transform_0(%arg0: i32) -> (i32, i32) {
    %c0_i32 = arith.constant 0 : i32
    %c0_i32_0 = arith.constant 0 : i32
    return %arg0, %c0_i32 : i32, i32
  }
  func.func @transform_1(%arg0: i32) -> (i32, i32) {
    %c0_i32 = arith.constant 0 : i32
    %c0_i32_0 = arith.constant 0 : i32
    %c0_i32_1 = arith.constant 0 : i32
    return %c0_i32, %c0_i32_0 : i32, i32
  }
  func.func @transform_2(%arg0: i32) -> (i32, i32) {
    %c0_i32 = arith.constant 0 : i32
    %c0_i32_0 = arith.constant 0 : i32
    %c0_i32_1 = arith.constant 0 : i32
    return %c0_i32, %c0_i32_0 : i32, i32
  }
  func.func @transform_3(%arg0: i32) -> (i32, i32) {
    %c0_i32 = arith.constant 0 : i32
    %c0_i32_0 = arith.constant 0 : i32
    %c0_i32_1 = arith.constant 0 : i32
    return %c0_i32, %c0_i32_0 : i32, i32
  }
  func.func @transform_4(%arg0: i32) -> (i32, i32) {
    %c0_i32 = arith.constant 0 : i32
    %c0_i32_0 = arith.constant 0 : i32
    %c0_i32_1 = arith.constant 0 : i32
    return %c0_i32, %c0_i32_0 : i32, i32
  }
  func.func @transform_5(%arg0: i32) -> (i32, i32) {
    %c0_i32 = arith.constant 0 : i32
    %c0_i32_0 = arith.constant 0 : i32
    return %c0_i32, %arg0 : i32, i32
  }
}

</mosaic_0001>

<bundles_post_ra>
// kernel: _hetero_noise_pallas.1
= control target key start
LH: loop header
LB: loop body
LE: loop exit
PB: predicated region body
PF: predicated region fallthrough
CT: control target
= control target key end

     0   :  { %10 = vsyncpa [#allocation3], 0  ;;  %s4631_s0 = inlined_call_operand.vmem [shape: f32[200,32], index: 0, kind: input, shape index: {}]   ;;  %s4632_s1 = inlined_call_operand.vmem [shape: f32[64,32], index: 1, kind: input, shape index: {}]   ;;  %s4633_s2 = inlined_call_operand.vmem [shape: f32[64,1], index: 2, kind: input, shape index: {}]   ;;  %s4634_s3 = inlined_call_operand.vmem [shape: f32[64,1], index: 3, kind: input, shape index: {}]   ;;  %s4635_s4 = inlined_call_operand.vmem [shape: f32[1,32], index: 4, kind: input, shape index: {}]   ;;  %s4636_s5 = inlined_call_operand.hbm [shape: f32[1,200], index: 5, kind: output, shape index: {}]  }
   0x1   :  { %12 = vsyncpa [#allocation3 + $0x1], 0  ;;  %s3511_s18 = smov 0   ;;  %s3513_s19 = smov 0  }
   0x2   :  { %s3515_s20 = smov 0   ;;  %s3517_s21 = smov 0  }
   0x3 LB: > { %s2223_s22 = sadd.s32 4294967295, %s3474_s21   ;;  %s2224_s23 = sadd.s32 4294967294, %s3474_s21   ;;  %s3474_s21 = sphi %s3517_s21, %s4938_s21   ;;  %s3470_s20 = sphi %s3515_s20, %s4937_s20   ;;  %s3466_s19 = sphi %s3513_s19, %s4936_s19   ;;  %s3462_s18 = sphi %s3511_s18, %s4935_s18  }
   0x4   : > { %s3534_s24 = sadd.s32 1, %s3474_s21   ;;  %s135_s25 = sadd.s32 1, %s3470_s20 }
   0x5   : > { %s132_s26 = ssub.s32 %s3474_s21, %s3534_s24  ;;  %p145_p0 = scmp.ne.s32.totalorder %s3470_s20, %s3466_s19 }
   0x6   : > { %p133_p1 = scmp.eq.s32.totalorder %s132_s26, 0  ;;  %p146_p2 = scmp.eq.s32.totalorder %s2223_s22, 1 }
   0x7   : > { %p151_p3 = scmp.ne.s32.totalorder %s3466_s19, %s3462_s18  ;;  %p152_p4 = scmp.eq.s32.totalorder %s2224_s23, 1 }
   0x8   : > { %s3544_s27 = scalar_select %p133_p1, %s3470_s20, %s135_s25  }
   0x9   : > { %p3546_p5 = por %p146_p2, %p145_p0  ;;  %p3550_p6 = por %p152_p4, %p151_p3 }
   0xa   : > { %p2227_p7 = scmp.ge.s32.totalorder %s3474_s21, 1  ;;  %p199_p8 = scmp.lt.s32.totalorder %s3474_s21, 3 }
   0xc   : > { %p200_p9 = pnand %p2227_p7, %p199_p8 }
   0xe   : > { %203 = sbr.rel (%p200_p9) target bundleno = 731 (0x2db), region = 40 }
  0x15   : > { %s3556_s30 = sshll.u32 %s2223_s22, 4  ;;  %v4654_v0 = vmov 0.0|0.0   ;;  %vm3477_vm0 = vmmov 0   ;;  %v4638_v1 = vmov 0.0   ;;  %vm285_vm1 = vcmask 261120   ;;  %v260_v35 = vld [vmem:[%s4632_s1] sm:$0xff] }
  0x16   : > { %p235_p10 = scmp.lt.s32.totalorder %s3556_s30, 24  ;;  %2953 = vmatprep.subr.bf16.mxu0 %v4654_v0  ;;  %2511 = vmatprep.mubr.msk.f32.mxu0 %vm3477_vm0, %v4638_v1  ;;  %v983_v40 = vsel %vm285_vm1, %v260_v35, 0  ;;  %s228_s13 = sand.u32 1, %s3466_s19  }
  0x17   : > { %v3667_v47 = vand.u32 4294901760, %v983_v40  ;;  %s229_s14 = scalar_lea.vmem [#allocation2], %s228_s13  ;;  %s4589_s22 = scalar_lea.hbm %s4636_s5, %s3556_s30 }
  0x18   : > { %s236_s6 = scalar_select %p235_p10, %s3556_s30, 24 }
  0x19   : > { %4760 = vst [vmem:[#allocation10_spill] sm:$0xff] %v3667_v47  ;;  %v3680_v56 = vsub.f32 %v983_v40, %v3667_v47  ;;  %s2169_s15 = sshll.u32 %s229_s14, 4  ;;  %s2157_s23 = scalar_lea.sflag [#allocation3], %s228_s13  ;;  %s4591_s15 = int_to_ptr.vmem [resolvable:$true] %s2169_s15 }
  0x1a   : > { %s2229_s7 = sshll.u32 %s236_s6, 3  ;;  %s3412_s25 = scalar_lea.vmem %s4591_s15, 16 }
  0x1b   : > { %s3566_s10 = scalar_lea.vmem %s4631_s0, %s2229_s7  ;;  %4761 = vst [vmem:[#allocation11_spill] sm:$0xff] %v3680_v56  ;;  %v4637_v63 = vand.u32 4294901760, %v3680_v56  ;;  %p3413_p11 = scmp.ne.s32.totalorder %s4591_s15, %s3412_s25 }
  0x1c   : > { %v244_v2 = vld [vmem:[%s3566_s10] sm:$0xff]  ;;  %v245_v3 = vld [vmem:[%s3566_s10 + $0x8] sm:$0xff]  ;;  %v246_v4 = vld [vmem:[%s3566_s10 + $0x10] sm:$0xff]  ;;  %s3480_s26 = smov [#allocation2]  }
  0x1d   : > { %v3572_v5 = vsel %vm285_vm1, %v244_v2, 0  ;;  %v3575_v6 = vsel %vm285_vm1, %v245_v3, 0  ;;  %v269_v7 = vmul.f32 %v244_v2, %v244_v2  ;;  %v270_v8 = vmul.f32 %v245_v3, %v245_v3  ;;  %v247_v9 = vld [vmem:[%s3566_s10 + $0x18] sm:$0xff]  ;;  %v248_v14 = vld [vmem:[%s3566_s10 + $0x20] sm:$0xff]  ;;  %v249_v15 = vld [vmem:[%s3566_s10 + $0x28] sm:$0xff]  ;;  %p3414_p12 = pnand %p3413_p11, %p3546_p5  ;;  %s3416_s6 = sshll.u32 %s3480_s26, 4  ;;  %s3417_s6 = int_to_ptr.vmem [resolvable:$false] %s3416_s6 }
  0x1e   : > { %v4651_v10 = vand.u32 4294901760, %v3572_v5  ;;  %v4650_v11 = vand.u32 4294901760, %v3575_v6  ;;  %v3581_v12 = vsel %vm285_vm1, %v246_v4, 0  ;;  %v3584_v13 = vsel %vm285_vm1, %v247_v9, 0  ;;  %v250_v38 = vld [vmem:[%s3566_s10 + $0x30] sm:$0xff]  ;;  %v251_v39 = vld [vmem:[%s3566_s10 + $0x38] sm:$0xff]  ;;  %p3419_p0 = scmp.lt.s32.totalorder %s4591_s15, %s3417_s6 }
  0x1f   : > { %v3589_v16 = vsel %vm285_vm1, %v269_v7, 0  ;;  %v3592_v17 = vsel %vm285_vm1, %v270_v8, 0  ;;  %v4647_v18 = vand.u32 4294901760, %v3581_v12  ;;  %v4646_v19 = vand.u32 4294901760, %v3584_v13  ;;  %v252_v54 = vld [vmem:[%s3566_s10 + $0x40] sm:$0xff]  ;;  %v253_v55 = vld [vmem:[%s3566_s10 + $0x48] sm:$0xff]  ;;  %p3415_p13 = pneg %p3414_p12 }
  0x20   : > { %v3600_v20 = vpack.c.bf16 %v4650_v11, %v4651_v10  ;;  %v338_v21 = vand.u32 4294901760, %v3589_v16  ;;  %v341_v22 = vand.u32 4294901760, %v3592_v17  ;;  %v271_v23 = vmul.f32 %v246_v4, %v246_v4  ;;  %v261_v2 = vld [vmem:[%s4632_s1 + $0x8] sm:$0xff]  ;;  %v255_v35 = vld [vmem:[%s3566_s10 + $0x58] sm:$0xff]  ;;  %s3418_s7 = scalar_lea.vmem %s3417_s6, 32 }
  0x21   : > { %v3608_v24 = vpack.c.bf16 %v4646_v19, %v4647_v18  ;;  %v272_v25 = vmul.f32 %v247_v9, %v247_v9  ;;  %v3611_v26 = vsel %vm285_vm1, %v248_v14, 0  ;;  %v3614_v27 = vsel %vm285_vm1, %v249_v15, 0  ;;  %v268_v9 = vld [vmem:[%s4635_s4] sm:$0x1]  ;;  %v257_v19 = vld [vmem:[%s3566_s10 + $0x68] sm:$0xff]  ;;  %p3420_p1 = scmp.lt.s32.totalorder %s3418_s7, %s3412_s25 }
  0x22   : > { %4755 = vst [vmem:[#allocation5_spill] sm:$0xff] %v3600_v20  ;;  %3098 = vmatprep.subr.bf16.mxu1 %v3600_v20  ;;  %v3621_v28 = vpack.c.bf16 %v341_v22, %v338_v21  ;;  %v3624_v29 = vsel %vm285_vm1, %v271_v23, 0  ;;  %v4645_v33 = vand.u32 4294901760, %v3611_v26  ;;  %v4644_v34 = vand.u32 4294901760, %v3614_v27  ;;  %v262_v23 = vld [vmem:[%s4632_s1 + $0x10] sm:$0xff] }
  0x23   : > { %4756 = vst [vmem:[#allocation6_spill] sm:$0xff] %v3608_v24  ;;  %3100 = vmatpush3.bf16.xpose.msra.mxu1 %v3600_v20  ;;  %v3628_v30 = vsel %vm285_vm1, %v272_v25, 0  ;;  %v4661_v31 = vand.u32 4294901760, %v3624_v29  ;;  %v273_v36 = vmul.f32 %v248_v14, %v248_v14  ;;  %v274_v37 = vmul.f32 %v249_v15, %v249_v15  ;;  %v254_v25 = vld [vmem:[%s3566_s10 + $0x50] sm:$0xff]  ;;  %p3421_p2 = por %p3420_p1, %p3419_p0 }
  0x24   : > { %4757 = vst [vmem:[#allocation7_spill] sm:$0xff] %v3621_v28  ;;  %2955 = vmatpush3.bf16.xpose.msra.mxu0 %v3621_v28  ;;  %3102 = vmatprep.subr.bf16.mxu1 %v3608_v24  ;;  %v4660_v32 = vand.u32 4294901760, %v3628_v30  ;;  %v3653_v42 = vpack.c.bf16 %v4644_v34, %v4645_v33  ;;  %v3662_v45 = vsel %vm285_vm1, %v250_v38, 0  ;;  %v3665_v46 = vsel %vm285_vm1, %v251_v39, 0  ;;  %v265_v34 = vld [vmem:[%s4632_s1 + $0x28] sm:$0xff]  ;;  %v256_v33 = vld [vmem:[%s3566_s10 + $0x60] sm:$0xff] }
  0x25   : > { %2956 = vmatprep.subr.bf16.mxu0 %v4654_v0  ;;  %v3656_v43 = vsel %vm285_vm1, %v273_v36, 0  ;;  %v3659_v44 = vsel %vm285_vm1, %v274_v37, 0  ;;  %v4643_v50 = vand.u32 4294901760, %v3662_v45  ;;  %v4642_v51 = vand.u32 4294901760, %v3665_v46  ;;  %p3422_p3 = pnand %p3421_p2, %p3415_p13 }
  0x26   : > { %v3647_v41 = vpack.c.bf16 %v4660_v32, %v4661_v31  ;;  %4759 = vst [vmem:[#allocation9_spill] sm:$0xff] %v3653_v42  ;;  %v4653_v48 = vand.u32 4294901760, %v3656_v43  ;;  %v4652_v49 = vand.u32 4294901760, %v3659_v44  ;;  %v275_v52 = vmul.f32 %v250_v38, %v250_v38 }
  0x27   : > { %v276_v53 = vmul.f32 %v251_v39, %v251_v39  ;;  %v3692_v58 = vpack.c.bf16 %v4642_v51, %v4643_v50  ;;  %v3701_v61 = vsel %vm285_vm1, %v252_v54, 0  ;;  %v3704_v62 = vsel %vm285_vm1, %v253_v55, 0 }
  0x28   : > { %4758 = vst [vmem:[#allocation8_spill] sm:$0xff] %v3647_v41  ;;  %v3686_v57 = vpack.c.bf16 %v4652_v49, %v4653_v48  ;;  %v3695_v59 = vsel %vm285_vm1, %v275_v52, 0  ;;  %v4641_v7 = vand.u32 4294901760, %v3701_v61  ;;  %v4640_v8 = vand.u32 4294901760, %v3704_v62 }
  0x29   : > { %4763 = vst [vmem:[#allocation13_spill] sm:$0xff] %v3692_v58  ;;  %v3698_v60 = vsel %vm285_vm1, %v276_v53, 0  ;;  %v4649_v3 = vand.u32 4294901760, %v3695_v59  ;;  %v277_v14 = vmul.f32 %v252_v54, %v252_v54  ;;  %v278_v15 = vmul.f32 %v253_v55, %v253_v55  ;;  %v263_v54 = vld [vmem:[%s4632_s1 + $0x18] sm:$0xff]  ;;  %v264_v55 = vld [vmem:[%s4632_s1 + $0x20] sm:$0xff] }
  0x2a   : > { %4762 = vst [vmem:[#allocation12_spill] sm:$0xff] %v3686_v57  ;;  %v4648_v4 = vand.u32 4294901760, %v3698_v60  ;;  %v1138_v36 = vsub.f32 %v3680_v56, %v4637_v63  ;;  %v986_v37 = vsel %vm285_vm1, %v261_v2, 0  ;;  %v287_v38 = vsel %vm285_vm1, %v268_v9, 0 }
  0x2b   : > { %3104 = vmatpush3.bf16.xpose.msra.mxu1 %v3608_v24  ;;  %v3741_v40 = vpack.c.bf16 %v4640_v8, %v4641_v7  ;;  %v989_v53 = vsel %vm285_vm1, %v262_v23, 0  ;;  %v3751_v2 = vsel %vm285_vm1, %v277_v14, 0  ;;  %v3754_v9 = vsel %vm285_vm1, %v278_v15, 0 }
  0x2c   : > { %2958 = vmatpush3.bf16.xpose.msra.mxu0 %v3647_v41  ;;  %3106 = vmatprep.subr.bf16.mxu1 %v3653_v42  ;;  %v3735_v39 = vpack.c.bf16 %v4648_v4, %v4649_v3  ;;  %v1139_v52 = vand.u32 4294901760, %v1138_v36  ;;  %v3757_v63 = vsel %vm285_vm1, %v254_v25, 0  ;;  %v3760_v36 = vsel %vm285_vm1, %v255_v35, 0 }
  0x2d   : > { %2959 = vmatprep.subr.bf16.mxu0 %v4654_v0  ;;  %4765 = vst [vmem:[#allocation15_spill] sm:$0xff] %v3741_v40  ;;  %v3762_v23 = vand.u32 4294901760, %v986_v37  ;;  %v3765_v1 = vand.u32 4294901760, %v287_v38  ;;  %v3767_v14 = vand.u32 4294901760, %v989_v53  ;;  %v992_v15 = vsel %vm285_vm1, %v263_v54, 0 }
  0x2e   : > { %4764 = vst [vmem:[#allocation14_spill] sm:$0xff] %v3735_v39  ;;  %2721 = vmatprep.mubr.f32.mxu1 %v1139_v52  ;;  %v995_v8 = vsel %vm285_vm1, %v264_v55, 0  ;;  %v4657_v52 = vand.u32 4294901760, %v3751_v2  ;;  %v4656_v7 = vand.u32 4294901760, %v3754_v9  ;;  %v4659_v51 = vand.u32 4294901760, %v3757_v63 }
  0x2f   : > { %4766 = vst [vmem:[#allocation16_spill] sm:$0xff] %v3762_v23  ;;  %4767 = vst [vmem:[#allocation17_spill] sm:$0xff] %v3765_v1  ;;  %v4658_v50 = vand.u32 4294901760, %v3760_v36  ;;  %v279_v54 = vmul.f32 %v254_v25, %v254_v25  ;;  %v280_v55 = vmul.f32 %v255_v35, %v255_v35  ;;  %v3784_v18 = vsub.f32 %v986_v37, %v3762_v23  ;;  %v266_v25 = vld [vmem:[%s4632_s1 + $0x30] sm:$0xff] }
  0x30   : > { %4768 = vst [vmem:[#allocation18_spill] sm:$0xff] %v3767_v14  ;;  %v3786_v4 = vand.u32 4294901760, %v992_v15  ;;  %v3789_v3 = vsub.f32 %v287_v38, %v3765_v1  ;;  %v3791_v11 = vand.u32 4294901760, %v995_v8  ;;  %v3794_v10 = vsel %vm285_vm1, %v265_v34, 0 }
  0x31   : > { %4769 = vst [vmem:[#allocation19_spill] sm:$0xff] %v3784_v18  ;;  %v3803_v35 = vpack.c.bf16 %v4656_v7, %v4657_v52  ;;  %v3809_v37 = vpack.c.bf16 %v4658_v50, %v4659_v51  ;;  %v3812_v38 = vsub.f32 %v989_v53, %v3767_v14  ;;  %v320_v34 = vsel %vm285_vm1, %v279_v54, 0 }
  0x32   : > { %4770 = vst [vmem:[#allocation20_spill] sm:$0xff] %v3786_v4  ;;  %4771 = vst [vmem:[#allocation21_spill] sm:$0xff] %v3789_v3  ;;  %v323_v49 = vsel %vm285_vm1, %v280_v55, 0  ;;  %v3817_v48 = vsel %vm285_vm1, %v256_v33, 0  ;;  %v3824_v52 = vsub.f32 %v992_v15, %v3786_v4  ;;  %v3827_v50 = vand.u32 4294901760, %v3794_v10 }
  0x33   : > { %3108 = vmatpush3.bf16.xpose.msra.mxu1 %v3653_v42  ;;  %4772 = vst [vmem:[#allocation22_spill] sm:$0xff] %v3791_v11  ;;  %4773 = vst [vmem:[#allocation23_spill] sm:$0xff] %v3803_v35  ;;  %v3830_v53 = vsel %vm285_vm1, %v266_v25, 0  ;;  %v281_v54 = vmul.f32 %v256_v33, %v256_v33  ;;  %v282_v55 = vmul.f32 %v257_v19, %v257_v19  ;;  %v368_v15 = vand.u32 4294901760, %v320_v34 }
  0x34   : > { %2961 = vmatpush3.bf16.xpose.msra.mxu0 %v3686_v57  ;;  %3110 = vmatprep.subr.bf16.mxu1 %v3692_v58  ;;  %4774 = vst [vmem:[#allocation24_spill] sm:$0xff] %v3809_v37  ;;  %v3835_v32 = vsub.f32 %v995_v8, %v3791_v11  ;;  %v371_v7 = vand.u32 4294901760, %v323_v49  ;;  %v3844_v33 = vsub.f32 %v3589_v16, %v338_v21  ;;  %v4775_v8 = vand.u32 4294901760, %v3624_v29  ;;  %v259_v16 = vld [vmem:[%s3566_s10 + $0x78] sm:$0xff] }
  0x35   : > { %2962 = vmatprep.subr.bf16.mxu0 %v4654_v0  ;;  %v4777_v31 = vmov 0.0|0.0   ;;  %v4778_v21 = vand.u32 4294901760, %v3656_v43  ;;  %v4787_v57 = vand.u32 4294901760, %v3817_v48  ;;  %v4792_v42 = vand.u32 4294901760, %v3584_v13 }
  0x36   : > { %v3854_v51 = vsub.f32 %v3624_v29, %v4775_v8  ;;  %v4780_v29 = vand.u32 4294901760, %v3572_v5  ;;  %v4794_v20 = vand.u32 4294901760, %v3751_v2  ;;  %v4796_v28 = vand.u32 4294901760, %v3611_v26 }
  0x37   : > { %v3918_v41 = vsub.f32 %v3584_v13, %v4792_v42  ;;  %v3951_v13 = vsub.f32 %v323_v49, %v371_v7  ;;  %v4808_v14 = vand.u32 4294901760, %v3614_v27  ;;  %v4810_v23 = vand.u32 4294901760, %v3784_v18 }
  0x38   : > { %v3877_v8 = vsub.f32 %v3572_v5, %v4780_v29  ;;  %v329_v5 = vsel %vm285_vm1, %v282_v55, 0  ;;  %v3896_v29 = vpack.c.bf16 %v371_v7, %v368_v15  ;;  %v4812_v47 = vand.u32 4294901760, %v3854_v51 }
  0x39   : > { %4793 = vst [vmem:[#allocation30_spill] sm:$0xff] %v3918_v41  ;;  %v4807_v49 = vand.u32 4294901760, %v3918_v41  ;;  %v3987_v1 = vsub.f32 %v3614_v27, %v4808_v14 }
  0x3a   : > { %4781 = vst [vmem:[#allocation25_spill] sm:$0xff] %v3877_v8  ;;  %4786 = vst [vmem:[#allocation27_spill] sm:$0xff] %v3896_v29  ;;  %v4684_v24 = vand.u32 4294901760, %v3877_v8  ;;  %v4003_v27 = vsub.f32 %v3854_v51, %v4812_v47 }
  0x3b   : > { %3112 = vmatpush3.bf16.xpose.msra.mxu1 %v3692_v58  ;;  %v4784_v58 = vand.u32 4294901760, %v3695_v59  ;;  %v1240_v7 = vsub.f32 %v3918_v41, %v4807_v49  ;;  %4809 = vst [vmem:[#allocation35_spill] sm:$0xff] %v3987_v1 }
  0x3c   : > { %2964 = vmatpush3.bf16.xpose.msra.mxu0 %v3735_v39  ;;  %3114 = vmatprep.subr.bf16.mxu1 %v3741_v40  ;;  %v3867_v39 = vsub.f32 %v3656_v43, %v4778_v21  ;;  %v4785_v21 = vand.u32 4294901760, %v3698_v60 }
  0x3d   : > { %2965 = vmatprep.subr.bf16.mxu0 %v4654_v0  ;;  %v3820_v0 = vsel %vm285_vm1, %v257_v19, 0  ;;  %v3849_v19 = vsub.f32 %v3592_v17, %v341_v22  ;;  %v4779_v17 = vand.u32 4294901760, %v3659_v44  ;;  %v3887_v43 = vsub.f32 %v3695_v59, %v4784_v58 }
  0x3e   : > { %v3908_v59 = vsel %vm285_vm1, %v259_v16, 0 }
  0x3f   : > { %v3872_v22 = vsub.f32 %v3659_v44, %v4779_v17  ;;  %v3892_v44 = vsub.f32 %v3698_v60, %v4785_v21  ;;  %v326_v17 = vsel %vm285_vm1, %v281_v54, 0  ;;  %v284_v21 = vmul.f32 %v259_v16, %v259_v16 }
  0x40   : > { %v4790_v54 = vand.u32 4294901760, %v3581_v12  ;;  %v4795_v16 = vand.u32 4294901760, %v3754_v9 }
  0x41   : > { %v335_v42 = vsel %vm285_vm1, %v284_v21, 0 }
  0x42   : > { %v3913_v55 = vsub.f32 %v3581_v12, %v4790_v54  ;;  %v3930_v12 = vsub.f32 %v3754_v9, %v4795_v16  ;;  %v3936_v54 = vsub.f32 %v320_v34, %v368_v15  ;;  %v3944_v9 = vsub.f32 %v3611_v26, %v4796_v28 }
  0x43   : > { %3116 = vmatpush3.bf16.xpose.msra.mxu1 %v3741_v40  ;;  %v258_v40 = vld [vmem:[%s3566_s10 + $0x70] sm:$0xff]  ;;  %v4801_v34 = vand.u32 4294901760, %v3849_v19 }
  0x44   : > { %2967 = vmatpush3.bf16.xpose.msra.mxu0 %v3803_v35  ;;  %3118 = vmatprep.subr.bf16.mxu1 %v3809_v37  ;;  %v4776_v35 = vand.u32 4294901760, %v3628_v30  ;;  %v3905_v58 = vsel %vm285_vm1, %v258_v40, 0  ;;  %v283_v60 = vmul.f32 %v258_v40, %v258_v40  ;;  %4791 = vst [vmem:[#allocation29_spill] sm:$0xff] %v3913_v55  ;;  %v3925_v40 = vsub.f32 %v3751_v2, %v4794_v20 }
  0x45   : > { %2968 = vmatprep.subr.bf16.mxu0 %v4777_v31  ;;  %4797 = vst [vmem:[#allocation31_spill] sm:$0xff] %v3944_v9  ;;  %v1219_v2 = vsub.f32 %v3877_v8, %v4684_v24  ;;  %v439_v15 = vsub.f32 %v3849_v19, %v4801_v34  ;;  %v4803_v24 = vand.u32 4294901760, %v3908_v59 }
  0x46   : > { %v3859_v25 = vsub.f32 %v3628_v30, %v4776_v35  ;;  %v4782_v30 = vand.u32 4294901760, %v3575_v6  ;;  %v332_v16 = vsel %vm285_vm1, %v283_v60, 0  ;;  %v4800_v60 = vand.u32 4294901760, %v3844_v33 }
  0x47   : > { %v380_v56 = vand.u32 4294901760, %v332_v16  ;;  %v440_v11 = vand.u32 4294901760, %v439_v15  ;;  %v4816_v15 = vand.u32 4294901760, %v3944_v9 }
  0x48   : > { %v3882_v35 = vsub.f32 %v3575_v6, %v4782_v30  ;;  %v4788_v6 = vand.u32 4294901760, %v3820_v0  ;;  %v432_v21 = vsub.f32 %v3844_v33, %v4800_v60  ;;  %v4806_v60 = vand.u32 4294901760, %v3913_v55 }
  0x49   : > { %v4813_v14 = vand.u32 4294901760, %v3859_v25 }
  0x4a   : > { %4783 = vst [vmem:[#allocation26_spill] sm:$0xff] %v3882_v35  ;;  %v3902_v30 = vpack.c.bf16 %v4788_v6, %v4787_v57  ;;  %v374_v57 = vand.u32 4294901760, %v326_v17  ;;  %v377_v6 = vand.u32 4294901760, %v329_v5  ;;  %v4799_v26 = vand.u32 4294901760, %v3882_v35 }
  0x4b   : > { %3120 = vmatpush3.bf16.xpose.msra.mxu1 %v3809_v37  ;;  %v1233_v34 = vsub.f32 %v3913_v55, %v4806_v60  ;;  %v433_v49 = vand.u32 4294901760, %v432_v21  ;;  %v4019_v21 = vsub.f32 %v3944_v9, %v4816_v15  ;;  %v4113_v15 = vpack.c.bf16 %v3882_v35, %v3877_v8 }
  0x4c   : > { %4789 = vst [vmem:[#allocation28_spill] sm:$0xff] %v3902_v30  ;;  %2970 = vmatpush3.bf16.xpose.msra.mxu0 %v3896_v29  ;;  %3122 = vmatprep.subr.bf16.mxu1 %v3902_v30  ;;  %v3953_v20 = vpack.c.bf16 %v377_v6, %v374_v57  ;;  %v1226_v28 = vsub.f32 %v3882_v35, %v4799_v26  ;;  %v4802_v29 = vand.u32 4294901760, %v3905_v58  ;;  %v383_v26 = vand.u32 4294901760, %v335_v42 }
  0x4d   : > { %2971 = vmatprep.subr.bf16.mxu0 %v4777_v31  ;;  %v3976_v4 = vsub.f32 %v326_v17, %v374_v57  ;;  %v3992_v17 = vsub.f32 %v3784_v18, %v4810_v23  ;;  %v4811_v57 = vand.u32 4294901760, %v3789_v3  ;;  %v4011_v23 = vsub.f32 %v329_v5, %v377_v6 }
  0x4e   : > { %4798 = vst [vmem:[#allocation32_spill] sm:$0xff] %v3953_v20  ;;  %v3973_v37 = vpack.c.bf16 %v4803_v24, %v4802_v29  ;;  %v1220_v24 = vand.u32 4294901760, %v1219_v2  ;;  %v1227_v29 = vand.u32 4294901760, %v1226_v28  ;;  %v4008_v2 = vsub.f32 %v3859_v25, %v4813_v14 }
  0x4f   : > { %4805 = vst [vmem:[#allocation34_spill] sm:$0xff] %v3976_v4  ;;  %v3997_v60 = vsub.f32 %v3789_v3, %v4811_v57  ;;  %4814 = vst [vmem:[#allocation36_spill] sm:$0xff] %v4011_v23  ;;  %v4014_v28 = vpack.c.bf16 %v383_v26, %v380_v56  ;;  %v4023_v57 = vsub.f32 %v332_v16, %v380_v56  ;;  %v1234_v14 = vand.u32 4294901760, %v1233_v34  ;;  %v267_v56 = vld [vmem:[%s4632_s1 + $0x38] sm:$0xff] }
  0x50   : > { %4804 = vst [vmem:[#allocation33_spill] sm:$0xff] %v3973_v37  ;;  %v4711_v5 = vand.u32 4294901760, %v3987_v1  ;;  %v4026_v6 = vsub.f32 %v335_v42, %v383_v26  ;;  %v1149_v3 = vand.u32 4294901760, %v3992_v17  ;;  %v2978_v23 = vpack.c.bf16 %v440_v11, %v433_v49 }
  0x51   : > { %4815 = vst [vmem:[#allocation37_spill] sm:$0xff] %v4014_v28  ;;  %v422_v18 = vand.u32 4294901760, %v3997_v60  ;;  %v4041_v26 = vsub.f32 %v3794_v10, %v3827_v50  ;;  %v4819_v17 = vand.u32 4294901760, %v3812_v38  ;;  %v4820_v49 = vand.u32 4294901760, %v3665_v46 }
  0x52   : > { %v4048_v34 = vsub.f32 %v3987_v1, %v4711_v5  ;;  %v4069_v5 = vand.u32 4294901760, %v3830_v53  ;;  %v4713_v16 = vand.u32 4294901760, %v3835_v32  ;;  %v4835_v35 = vmov 0.0  }
  0x53   : > { %3124 = vmatpush3.bf16.xpose.msra.mxu1 %v3902_v30  ;;  %v1241_v30 = vand.u32 4294901760, %v1240_v7  ;;  %v4712_v7 = vand.u32 4294901760, %v3824_v52  ;;  %4817 = vst [vmem:[#allocation38_spill] sm:$0xff] %v4041_v26  ;;  %v1158_v60 = vsub.f32 %v3812_v38, %v4819_v17  ;;  %v4061_v10 = vsub.f32 %v3665_v46, %v4820_v49 }
  0x54   : > { %2973 = vmatpush3.bf16.xpose.msra.mxu0 %v3953_v20  ;;  %3126 = vmatprep.subr.bf16.mxu1 %v3973_v37  ;;  %v3129_v20 = vpack.c.bf16 %v1227_v29, %v1220_v24  ;;  %v4818_v24 = vand.u32 4294901760, %v3662_v45  ;;  %v4823_v46 = vand.u32 4294901760, %v3757_v63 }
  0x55   : > { %2974 = vmatprep.subr.bf16.mxu0 %v4777_v31  ;;  %v4043_v11 = vpack.c.bf16 %v1241_v30, %v1234_v14  ;;  %v4821_v30 = vand.u32 4294901760, %v3701_v61 }
  0x56   : > { %v4053_v29 = vsub.f32 %v3662_v45, %v4818_v24  ;;  %v1004_v45 = vsel %vm285_vm1, %v267_v56, 0  ;;  %v4822_v24 = vand.u32 4294901760, %v3704_v62  ;;  %v4081_v49 = vsub.f32 %v3757_v63, %v4823_v46 }
  0x57   : > { %v4066_v14 = vsub.f32 %v3701_v61, %v4821_v30  ;;  %v4824_v61 = vand.u32 4294901760, %v3760_v36  ;;  %v4715_v56 = vand.u32 4294901760, %v4041_v26  ;;  %v4096_v63 = vsub.f32 %v3830_v53, %v4069_v5 }
  0x58   : > { %v4076_v17 = vsub.f32 %v3704_v62, %v4822_v24  ;;  %v1168_v62 = vsub.f32 %v3824_v52, %v4712_v7  ;;  %v4098_v24 = vand.u32 4294901760, %v1004_v45  ;;  %v1159_v7 = vand.u32 4294901760, %v1158_v60 }
  0x59   : > { %v4086_v30 = vsub.f32 %v3760_v36, %v4824_v61  ;;  %4825 = vst [vmem:[#allocation39_spill] sm:$0xff] %v4096_v63  ;;  %v4826_v36 = vand.u32 4294901760, %v3817_v48  ;;  %v4827_v61 = vand.u32 4294901760, %v3820_v0  ;;  %v4828_v53 = vand.u32 4294901760, %v3905_v58 }
  0x5a   : > { %v4131_v60 = vpack.c.bf16 %v3918_v41, %v3913_v55  ;;  %v4833_v55 = vld [vmem:[#allocation36_spill] sm:$0xff] }
  0x5b   : > { %3128 = vmatpush3.bf16.xpose.msra.mxu1 %v3973_v37  ;;  %v4104_v46 = vsub.f32 %v3817_v48, %v4826_v36  ;;  %v4109_v47 = vsub.f32 %v3820_v0, %v4827_v61  ;;  %v4118_v42 = vsub.f32 %v3905_v58, %v4828_v53  ;;  %v4122_v48 = vsub.f32 %v1004_v45, %v4098_v24 }
  0x5c   : > { %2976 = vmatpush3.bf16.xpose.msra.mxu0 %v4014_v28  ;;  %3130 = vmatprep.subr.bf16.mxu1 %v3129_v20  ;;  %v1178_v0 = vsub.f32 %v3835_v32, %v4713_v16  ;;  %v4137_v61 = vpack.c.bf16 %v3987_v1, %v3944_v9  ;;  %v1169_v45 = vand.u32 4294901760, %v1168_v62  ;;  %v4830_v53 = vand.u32 4294901760, %v3908_v59 }
  0x5d   : > { %2977 = vmatprep.subr.bf16.mxu0 %v4777_v31  ;;  %4829 = vst [vmem:[#allocation40_spill] sm:$0xff] %v4122_v48  ;;  %v1188_v16 = vsub.f32 %v4041_v26, %v4715_v56  ;;  %v4151_v58 = vpack.c.bf16 %v4061_v10, %v4053_v29  ;;  %v4157_v62 = vpack.c.bf16 %v4076_v17, %v4066_v14  ;;  %v4834_v1 = vand.u32 4294901760, %v4122_v48 }
  0x5e   : > { %v4142_v36 = vsub.f32 %v3908_v59, %v4830_v53  ;;  %v4831_v53 = vand.u32 4294901760, %v4096_v63  ;;  %v4167_v9 = vpack.c.bf16 %v4086_v30, %v4081_v49  ;;  %v1179_v41 = vand.u32 4294901760, %v1178_v0 }
  0x5f   : > { %v4173_v59 = vpack.c.bf16 %v4109_v47, %v4104_v46  ;;  %v1189_v28 = vand.u32 4294901760, %v1188_v16  ;;  %v4839_v16 = vand.u32 4294901760, %v4008_v2  ;;  %v4748_v2 = vand.u32 4294901760, %v3887_v43 }
  0x60   : > { %v1198_v56 = vsub.f32 %v4096_v63, %v4831_v53  ;;  %v4179_v53 = vpack.c.bf16 %v4142_v36, %v4118_v42 }
  0x62   : > { %2722 = vmatmul.mubr.f32.vlgmr.msra.gmra.mrb[0].mxu1 %v1149_v3  ;;  %v4832_v3 = vmov %v3976_v4  ;;  %v1255_v4 = vand.u32 4294901760, %v4048_v34  ;;  %v4836_v34 = vand.u32 4294901760, %v3867_v39  ;;  %v1199_v8 = vand.u32 4294901760, %v1198_v56 }
  0x63   : > { %3132 = vmatpush3.bf16.xpose.msra.mxu1 %v3129_v20  ;;  %2512 = vmatmul.mubr.f32.vlgmr.msra.gmra.mrb[0].mxu0 %v422_v18  ;;  %v4837_v18 = vand.u32 4294901760, %v3872_v22  ;;  %v4747_v56 = vand.u32 4294901760, %v3892_v44 }
  0x64   : > { %2979 = vmatpush3.bf16.xpose.msra.mxu0 %v2978_v23  ;;  %3134 = vmatprep.subr.bf16.mxu1 %v4043_v11  ;;  %v1208_v23 = vsub.f32 %v4122_v48, %v4834_v1  ;;  %v460_v20 = vsub.f32 %v3867_v39, %v4836_v34  ;;  %v4840_v1 = vand.u32 4294901760, %v4019_v21  ;;  %v4841_v48 = vand.u32 4294901760, %v4053_v29 }
  0x65   : > { %2980 = vmatprep.subr.bf16.mxu0 %v4777_v31  ;;  %2724 = vmatprep.mubr.f32.mxu1 %v1159_v7  ;;  %v467_v0 = vsub.f32 %v3872_v22, %v4837_v18  ;;  %v4838_v7 = vand.u32 4294901760, %v4003_v27  ;;  %v4842_v34 = vand.u32 4294901760, %v4061_v10 }
  0x66   : > { %2725 = vmatmul.mubr.f32.gmra.mrb[2].mxu1 %v1169_v45  ;;  %2546 = vmatprep.mubr.msk.f32.mxu0 %vm3477_vm0, %v4835_v35  ;;  %v3137_v37 = vpack.c.bf16 %v1255_v4, %v4840_v1  ;;  %v1261_v63 = vsub.f32 %v4053_v29, %v4841_v48  ;;  %v1209_v18 = vand.u32 4294901760, %v1208_v23  ;;  %v4741_v48 = vand.u32 4294901760, %v4066_v14 }
  0x67   : > { %2727 = vmatprep.mubr.f32.mxu1 %v1179_v41  ;;  %v2981_v45 = vpack.c.bf16 %v4839_v16, %v4838_v7  ;;  %v1268_v26 = vsub.f32 %v4061_v10, %v4842_v34  ;;  %v461_v41 = vand.u32 4294901760, %v460_v20  ;;  %v468_v27 = vand.u32 4294901760, %v467_v0 }
  0x68   : > { %v1262_v4 = vand.u32 4294901760, %v1261_v63  ;;  %v4731_v7 = vand.u32 4294901760, %v4076_v17  ;;  %v4733_v1 = vand.u32 4294901760, %v3930_v12 }
  0x69   : > { %v1269_v21 = vand.u32 4294901760, %v1268_v26  ;;  %v2984_v20 = vpack.c.bf16 %v468_v27, %v461_v41  ;;  %v1275_v26 = vsub.f32 %v4066_v14, %v4741_v48  ;;  %v4735_v41 = vand.u32 4294901760, %v4081_v49 }
  0x6a   : > { %2728 = vmatmul.mubr.f32.gmra.mrb[4].mxu1 %v1189_v28  ;;  %v474_v28 = vsub.f32 %v3887_v43, %v4748_v2  ;;  %v1282_v0 = vsub.f32 %v4076_v17, %v4731_v7  ;;  %v4734_v27 = vand.u32 4294901760, %v4086_v30  ;;  %v4736_v7 = vand.u32 4294901760, %v3936_v54 }
  0x6b   : > { %3136 = vmatpush3.bf16.xpose.msra.mxu1 %v4043_v11  ;;  %2730 = vmatprep.mubr.f32.mxu1 %v1199_v8  ;;  %v481_v11 = vsub.f32 %v3892_v44, %v4747_v56  ;;  %v4843_v8 = vld [vmem:[#allocation10_spill] sm:$0xff]  ;;  %v3141_v63 = vpack.c.bf16 %v1269_v21, %v1262_v4  ;;  %v1276_v34 = vand.u32 4294901760, %v1275_v26  ;;  %v495_v4 = vsub.f32 %v3930_v12, %v4733_v1 }
  0x6c   : > { %2982 = vmatpush3.bf16.xpose.msra.mxu0 %v2981_v45  ;;  %3138 = vmatprep.subr.bf16.mxu1 %v3137_v37  ;;  %v475_v23 = vand.u32 4294901760, %v474_v28  ;;  %v4732_v45 = vand.u32 4294901760, %v3925_v40  ;;  %v4743_v48 = vand.u32 4294901760, %v4023_v57  ;;  %v4881_v56 = vld [vmem:[#allocation26_spill] sm:$0xff] }
  0x6d   : > { %2983 = vmatprep.subr.bf16.mxu0 %v4777_v31  ;;  %v482_v16 = vand.u32 4294901760, %v481_v11  ;;  %v1289_v11 = vsub.f32 %v4081_v49, %v4735_v41  ;;  %v4739_v41 = vand.u32 4294901760, %v4832_v3  ;;  %v4882_v2 = vand.u32 4294901760, %v4881_v56 }
  0x6e   : > { %2731 = vmatmul.mubr.f32.gmra.mrb[6].mxu1 %v1209_v18  ;;  %v1283_v18 = vand.u32 4294901760, %v1282_v0  ;;  %v496_v0 = vand.u32 4294901760, %v495_v4 }
  0x6f   : > { %2765 = vmatprep.mubr.f32.mxu1 %v4843_v8  ;;  %v2987_v21 = vpack.c.bf16 %v482_v16, %v475_v23  ;;  %v1290_v1 = vand.u32 4294901760, %v1289_v11  ;;  %v4740_v16 = vand.u32 4294901760, %v4104_v46 }
  0x70   : > { %v3145_v28 = vpack.c.bf16 %v1283_v18, %v1276_v34  ;;  %v4738_v34 = vand.u32 4294901760, %v4109_v47 }
  0x72   : > { %v1310_v11 = vsub.f32 %v4109_v47, %v4738_v34 }
  0x73   : > { %3140 = vmatpush3.bf16.xpose.msra.mxu1 %v3137_v37  ;;  %v488_v37 = vsub.f32 %v3925_v40, %v4732_v45  ;;  %v4737_v45 = vand.u32 4294901760, %v3951_v13 }
  0x74   : > { %2985 = vmatpush3.bf16.xpose.msra.mxu0 %v2984_v20  ;;  %3142 = vmatprep.subr.bf16.mxu1 %v3141_v63  ;;  %v1296_v20 = vsub.f32 %v4086_v30, %v4734_v27 }
  0x75   : > { %2986 = vmatprep.subr.bf16.mxu0 %v4777_v31  ;;  %v489_v26 = vand.u32 4294901760, %v488_v37  ;;  %v509_v18 = vsub.f32 %v3951_v13, %v4737_v45 }
  0x76   : > { %v1297_v23 = vand.u32 4294901760, %v1296_v20 }
  0x77   : > { %v2990_v37 = vpack.c.bf16 %v496_v0, %v489_v26  ;;  %v510_v27 = vand.u32 4294901760, %v509_v18  ;;  %v1311_v26 = vand.u32 4294901760, %v1310_v11  ;;  %v4744_v0 = vand.u32 4294901760, %v4142_v36 }
  0x78   : > { %v3149_v4 = vpack.c.bf16 %v1297_v23, %v1290_v1  ;;  %v4745_v1 = vand.u32 4294901760, %v4118_v42 }
  0x7b   : > { %3144 = vmatpush3.bf16.xpose.msra.mxu1 %v3141_v63  ;;  %v502_v63 = vsub.f32 %v3936_v54, %v4736_v7  ;;  %v4746_v7 = vand.u32 4294901760, %v4833_v55 }
  0x7c   : > { %2988 = vmatpush3.bf16.xpose.msra.mxu0 %v2987_v21  ;;  %3146 = vmatprep.subr.bf16.mxu1 %v3145_v28  ;;  %v1303_v21 = vsub.f32 %v4104_v46, %v4740_v16 }
  0x7d   : > { %2989 = vmatprep.subr.bf16.mxu0 %v4777_v31  ;;  %v503_v20 = vand.u32 4294901760, %v502_v63  ;;  %v523_v23 = vsub.f32 %v4833_v55, %v4746_v7 }
  0x7e   : > { %v1304_v45 = vand.u32 4294901760, %v1303_v21  ;;  %v1324_v21 = vsub.f32 %v4142_v36, %v4744_v0  ;;  %v4878_v0 = vld [vmem:[#allocation33_spill] sm:$0xff] }
  0x7f   : > { %v2993_v63 = vpack.c.bf16 %v510_v27, %v503_v20  ;;  %v524_v34 = vand.u32 4294901760, %v523_v23  ;;  %v4742_v27 = vand.u32 4294901760, %v4026_v6 }
  0x80   : > { %v3153_v18 = vpack.c.bf16 %v1311_v26, %v1304_v45  ;;  %v1325_v16 = vand.u32 4294901760, %v1324_v21  ;;  %v530_v26 = vsub.f32 %v4023_v57, %v4743_v48  ;;  %v4849_v21 = vld [vmem:[#allocation22_spill] sm:$0xff]  ;;  %v4877_v48 = vld [vmem:[#allocation32_spill] sm:$0xff] }
  0x83   : > { %3148 = vmatpush3.bf16.xpose.msra.mxu1 %v3145_v28  ;;  %v516_v28 = vsub.f32 %v4832_v3, %v4739_v41 }
  0x84   : > { %2991 = vmatpush3.bf16.xpose.msra.mxu0 %v2990_v37  ;;  %3150 = vmatprep.subr.bf16.mxu1 %v3149_v4  ;;  %v1317_v37 = vsub.f32 %v4118_v42, %v4745_v1  ;;  %v4879_v1 = vld [vmem:[#allocation25_spill] sm:$0xff] }
  0x85   : > { %2992 = vmatprep.subr.bf16.mxu0 %v4777_v31  ;;  %v517_v11 = vand.u32 4294901760, %v516_v28  ;;  %v531_v28 = vand.u32 4294901760, %v530_v26  ;;  %v4859_v26 = vld [vmem:[#allocation19_spill] sm:$0xff]  ;;  %v4880_v7 = vand.u32 4294901760, %v4879_v1 }
  0x86   : > { %v1318_v41 = vand.u32 4294901760, %v1317_v37  ;;  %v4848_v37 = vld [vmem:[#allocation20_spill] sm:$0xff]  ;;  %v4890_v56 = vand.u32 4294901760, %v4859_v26 }
  0x87   : > { %v2996_v45 = vpack.c.bf16 %v524_v34, %v517_v11  ;;  %v4846_v34 = vpack.c.bf16 %v3849_v19, %v3844_v33  ;;  %v4851_v11 = vld [vmem:[#allocation11_spill] sm:$0xff] }
  0x88   : > { %v3157_v20 = vpack.c.bf16 %v1325_v16, %v1318_v41  ;;  %v4844_v41 = vld [vmem:[#allocation16_spill] sm:$0xff]  ;;  %v4845_v16 = vld [vmem:[#allocation17_spill] sm:$0xff] }
  0x8b   : > { %3152 = vmatpush3.bf16.xpose.msra.mxu1 %v3149_v4  ;;  %v537_v4 = vsub.f32 %v4026_v6, %v4742_v27  ;;  %v4876_v27 = vld [vmem:[#allocation28_spill] sm:$0xff] }
  0x8c   : > { %2994 = vmatpush3.bf16.xpose.msra.mxu0 %v2993_v63  ;;  %3154 = vmatprep.subr.bf16.mxu1 %v3153_v18 }
  0x8d   : > { %2995 = vmatprep.subr.bf16.mxu0 %v4777_v31  ;;  %v538_v23 = vand.u32 4294901760, %v537_v4  ;;  %v4861_v4 = vld [vmem:[#allocation7_spill] sm:$0xff] }
  0x8f   : > { %v2999_v63 = vpack.c.bf16 %v538_v23, %v531_v28  ;;  %v4862_v28 = vld [vmem:[#allocation6_spill] sm:$0xff]  ;;  %v4864_v23 = vld [vmem:[#allocation39_spill] sm:$0xff] }
  0x93   : > { %3156 = vmatpush3.bf16.xpose.msra.mxu1 %v3153_v18  ;;  %v4847_v18 = vld [vmem:[#allocation18_spill] sm:$0xff] }
  0x94   : > { %2997 = vmatpush3.bf16.xpose.msra.mxu0 %v2996_v45  ;;  %3158 = vmatprep.subr.bf16.mxu1 %v3157_v20  ;;  %v4852_v45 = vpack.c.bf16 %v3872_v22, %v3867_v39 }
  0x95   : > { %2998 = vmatprep.subr.bf16.mxu0 %v4777_v31 }
  0x9b   : > { %3160 = vmatpush3.bf16.xpose.msra.mxu1 %v3157_v20  ;;  %v4858_v20 = vld [vmem:[#allocation5_spill] sm:$0xff] }
  0x9c   : > { %3000 = vmatpush3.bf16.xpose.msra.mxu0 %v2999_v63  ;;  %3162 = vmatprep.subr.bf16.mxu1 %v4113_v15  ;;  %v4865_v63 = vld [vmem:[#allocation8_spill] sm:$0xff] }
  0x9d   : > { %3001 = vmatprep.subr.bf16.mxu0 %v4777_v31 }
  0xa2   : > { %2766 = vmatmul.mubr.f32.vlgmr.msra.gmra.mrb[0].mxu1 %v4844_v41 }
  0xa3   : > { %3164 = vmatpush3.bf16.xpose.msra.mxu1 %v4113_v15  ;;  %2547 = vmatmul.mubr.f32.vlgmr.msra.gmra.mrb[0].mxu0 %v4845_v16  ;;  %v4850_v15 = vpack.c.bf16 %v3859_v25, %v3854_v51 }
  0xa4   : > { %3003 = vmatpush3.bf16.xpose.msra.mxu0 %v4846_v34  ;;  %3166 = vmatprep.subr.bf16.mxu1 %v4131_v60  ;;  %v4866_v34 = vld [vmem:[#allocation9_spill] sm:$0xff] }
  0xa5   : > { %3004 = vmatprep.subr.bf16.mxu0 %v4777_v31  ;;  %2768 = vmatprep.mubr.f32.mxu1 %v4847_v18 }
  0xa6   : > { %2769 = vmatmul.mubr.f32.gmra.mrb[2].mxu1 %v4848_v37  ;;  %2581 = vmatprep.mubr.msk.f32.mxu0 %vm3477_vm0, %v4835_v35 }
  0xa7   : > { %2771 = vmatprep.mubr.f32.mxu1 %v4849_v21 }
  0xaa   : > { %2772 = vmatmul.mubr.f32.gmra.mrb[4].mxu1 %v3827_v50 }
  0xab   : > { %3168 = vmatpush3.bf16.xpose.msra.mxu1 %v4131_v60  ;;  %2774 = vmatprep.mubr.f32.mxu1 %v4069_v5  ;;  %v4853_v60 = vpack.c.bf16 %v3892_v44, %v3887_v43 }
  0xac   : > { %3006 = vmatpush3.bf16.xpose.msra.mxu0 %v4850_v15  ;;  %3170 = vmatprep.subr.bf16.mxu1 %v4137_v61  ;;  %v4867_v15 = vld [vmem:[#allocation40_spill] sm:$0xff] }
  0xad   : > { %3007 = vmatprep.subr.bf16.mxu0 %v4777_v31 }
  0xae   : > { %2775 = vmatmul.mubr.f32.gmra.mrb[6].mxu1 %v4098_v24 }
  0xaf   : > { %2809 = vmatprep.mubr.f32.mxu1 %v4851_v11 }
  0xb3   : > { %3172 = vmatpush3.bf16.xpose.msra.mxu1 %v4137_v61  ;;  %v4854_v61 = vpack.c.bf16 %v3930_v12, %v3925_v40 }
  0xb4   : > { %3009 = vmatpush3.bf16.xpose.msra.mxu0 %v4852_v45  ;;  %3174 = vmatprep.subr.bf16.mxu1 %v4151_v58  ;;  %v4868_v45 = vand.u32 4294901760, %v4851_v11  ;;  %v4873_v11 = vld [vmem:[#allocation23_spill] sm:$0xff] }
  0xb5   : > { %3010 = vmatprep.subr.bf16.mxu0 %v4777_v31 }
  0xbb   : > { %3176 = vmatpush3.bf16.xpose.msra.mxu1 %v4151_v58  ;;  %v4855_v58 = vpack.c.bf16 %v3951_v13, %v3936_v54 }
  0xbc   : > { %3012 = vmatpush3.bf16.xpose.msra.mxu0 %v4853_v60  ;;  %3178 = vmatprep.subr.bf16.mxu1 %v4157_v62  ;;  %v4869_v60 = vld [vmem:[#allocation12_spill] sm:$0xff] }
  0xbd   : > { %3013 = vmatprep.subr.bf16.mxu0 %v4777_v31 }
  0xc3   : > { %3180 = vmatpush3.bf16.xpose.msra.mxu1 %v4157_v62  ;;  %v4856_v62 = vpack.c.bf16 %v4833_v55, %v4832_v3 }
  0xc4   : > { %3015 = vmatpush3.bf16.xpose.msra.mxu0 %v4854_v61  ;;  %3182 = vmatprep.subr.bf16.mxu1 %v4167_v9  ;;  %v4870_v61 = vld [vmem:[#allocation13_spill] sm:$0xff] }
  0xc5   : > { %3016 = vmatprep.subr.bf16.mxu0 %v4777_v31 }
  0xcb   : > { %3184 = vmatpush3.bf16.xpose.msra.mxu1 %v4167_v9  ;;  %v4857_v9 = vpack.c.bf16 %v4026_v6, %v4023_v57 }
  0xcc   : > { %3018 = vmatpush3.bf16.xpose.msra.mxu0 %v4855_v58  ;;  %3186 = vmatprep.subr.bf16.mxu1 %v4173_v59  ;;  %v4871_v58 = vld [vmem:[#allocation14_spill] sm:$0xff] }
  0xcd   : > { %3019 = vmatprep.subr.bf16.mxu0 %v4777_v31 }
  0xd3   : > { %3188 = vmatpush3.bf16.xpose.msra.mxu1 %v4173_v59  ;;  %v4860_v59 = vld [vmem:[#allocation21_spill] sm:$0xff] }
  0xd4   : > { %3021 = vmatpush3.bf16.xpose.msra.mxu0 %v4856_v62  ;;  %3190 = vmatprep.subr.bf16.mxu1 %v4179_v53  ;;  %v4872_v62 = vld [vmem:[#allocation15_spill] sm:$0xff] }
  0xd5   : > { %3022 = vmatprep.subr.bf16.mxu0 %v4777_v31 }
  0xdb   : > { %3192 = vmatpush3.bf16.xpose.msra.mxu1 %v4179_v53  ;;  %v4863_v53 = vld [vmem:[#allocation38_spill] sm:$0xff] }
  0xdc   : > { %3024 = vmatpush3.bf16.xpose.msra.mxu0 %v4857_v9  ;;  %3194 = vmatprep.subr.bf16.mxu1 %v4858_v20  ;;  %v4874_v9 = vld [vmem:[#allocation24_spill] sm:$0xff] }
  0xdd   : > { %3025 = vmatprep.subr.bf16.mxu0 %v4777_v31 }
  0xe2   : > { %2810 = vmatmul.mubr.f32.vlgmr.msra.gmra.mrb[0].mxu1 %v4859_v26 }
  0xe3   : > { %3196 = vmatpush3.bf16.xpose.msra.mxu1 %v4858_v20  ;;  %2582 = vmatmul.mubr.f32.vlgmr.msra.gmra.mrb[0].mxu0 %v4860_v59 }
  0xe4   : > { %3027 = vmatpush3.bf16.xpose.msra.mxu0 %v4861_v4  ;;  %3198 = vmatprep.subr.bf16.mxu1 %v4862_v28 }
  0xe5   : > { %3028 = vmatprep.subr.bf16.mxu0 %v4777_v31  ;;  %2812 = vmatprep.mubr.f32.mxu1 %v3812_v38 }
  0xe6   : > { %2813 = vmatmul.mubr.f32.gmra.mrb[2].mxu1 %v3824_v52  ;;  %2616 = vmatprep.mubr.msk.f32.mxu0 %vm3477_vm0, %v4835_v35 }
  0xe7   : > { %2815 = vmatprep.mubr.f32.mxu1 %v3835_v32 }
  0xea   : > { %2816 = vmatmul.mubr.f32.gmra.mrb[4].mxu1 %v4863_v53 }
  0xeb   : > { %3200 = vmatpush3.bf16.xpose.msra.mxu1 %v4862_v28  ;;  %2818 = vmatprep.mubr.f32.mxu1 %v4864_v23 }
  0xec   : > { %3030 = vmatpush3.bf16.xpose.msra.mxu0 %v4865_v63  ;;  %3202 = vmatprep.subr.bf16.mxu1 %v4866_v34 }
  0xed   : > { %3031 = vmatprep.subr.bf16.mxu0 %v4777_v31 }
  0xee   : > { %2819 = vmatmul.mubr.f32.gmra.mrb[6].mxu1 %v4867_v15 }
  0xef   : > { %2853 = vmatprep.mubr.f32.mxu1 %v4868_v45  ;;  %v4875_v45 = vld [vmem:[#allocation27_spill] sm:$0xff] }
  0xf3   : > { %3204 = vmatpush3.bf16.xpose.msra.mxu1 %v4866_v34 }
  0xf4   : > { %3033 = vmatpush3.bf16.xpose.msra.mxu0 %v4869_v60  ;;  %3206 = vmatprep.subr.bf16.mxu1 %v4870_v61 }
  0xf5   : > { %3034 = vmatprep.subr.bf16.mxu0 %v4777_v31 }
  0xfb   : > { %3208 = vmatpush3.bf16.xpose.msra.mxu1 %v4870_v61  ;;  %v4888_v61 = vld [vmem:[#allocation30_spill] sm:$0xff] }
  0xfc   : > { %3036 = vmatpush3.bf16.xpose.msra.mxu0 %v4871_v58  ;;  %3210 = vmatprep.subr.bf16.mxu1 %v4872_v62  ;;  %v4889_v60 = vand.u32 4294901760, %v4888_v61  ;;  %v4899_v61 = vld [vmem:[#allocation35_spill] sm:$0xff] }
  0xfd   : > { %3037 = vmatprep.subr.bf16.mxu0 %v4777_v31 }
 0x103   : > { %3212 = vmatpush3.bf16.xpose.msra.mxu1 %v4872_v62  ;;  %v4886_v62 = vld [vmem:[#allocation29_spill] sm:$0xff] }
 0x104   : > { %3039 = vmatpush3.bf16.xpose.msra.mxu0 %v4873_v11  ;;  %3214 = vmatprep.subr.bf16.mxu1 %v4874_v9  ;;  %v3225_v11 = vpack.c.bf16 %v4882_v2, %v4880_v7  ;;  %v4887_v58 = vand.u32 4294901760, %v4886_v62  ;;  %v4891_v2 = vand.u32 4294901760, %v4860_v59  ;;  %v4895_v7 = vand.u32 4294901760, %v3854_v51  ;;  %v4897_v59 = vld [vmem:[#allocation31_spill] sm:$0xff]  ;;  %v1996_v51 = vld [vmem:[%s4633_s2] sm:$0xff] }
 0x105   : > { %3040 = vmatprep.subr.bf16.mxu0 %v4777_v31  ;;  %v4901_v62 = vand.u32 4294901760, %v4863_v53  ;;  %v3479_v53 = vmov 0  }
 0x106   : > { %v3229_v1 = vpack.c.bf16 %v4889_v60, %v4887_v58  ;;  %v4898_v60 = vand.u32 4294901760, %v4897_v59  ;;  %v4900_v58 = vand.u32 4294901760, %v4899_v61  ;;  %3390 = vset.pattern.permute.xlu0 %v3479_v53  ;;  %3391 = vset.pattern.permute.xlu1 %v3479_v53  ;;  %v2003_v59 = vld [vmem:[%s4633_s2 + $0x38] sm:$0xff]  ;;  %v4914_v61 = vand.u32 4294901760, %v4081_v49 }
 0x107   : > { %2006 = vperm.xlu0 %3390, %v1996_v51   ;;  %v4916_v49 = vand.u32 4294901760, %v3936_v54  ;;  %v4918_v51 = vand.u32 4294901760, %v4104_v46  ;;  %v4921_v54 = vand.u32 4294901760, %v4833_v55  ;;  %v4922_v46 = vand.u32 4294901760, %v4118_v42  ;;  %v4927_v55 = vld [vmem:[#allocation13_spill] sm:$0xff]  ;;  %v4930_v42 = vld [vmem:[#allocation23_spill] sm:$0xff] }
 0x10b   : > { %3216 = vmatpush3.bf16.xpose.msra.mxu1 %v4874_v9 }
 0x10c   : > { %3042 = vmatpush3.bf16.xpose.msra.mxu0 %v4875_v45  ;;  %3218 = vmatprep.subr.bf16.mxu1 %v4876_v27  ;;  %v4883_v45 = vld [vmem:[#allocation37_spill] sm:$0xff] }
 0x10d   : > { %3043 = vmatprep.subr.bf16.mxu0 %v4777_v31 }
 0x113   : > { %3220 = vmatpush3.bf16.xpose.msra.mxu1 %v4876_v27  ;;  %v4884_v27 = vand.u32 4294901760, %v3844_v33  ;;  %v4892_v33 = vand.u32 4294901760, %v3812_v38  ;;  %v3233_v38 = vpack.c.bf16 %v4900_v58, %v4898_v60  ;;  %v4915_v58 = vand.u32 4294901760, %v4086_v30 }
 0x114   : > { %3045 = vmatpush3.bf16.xpose.msra.mxu0 %v4877_v48  ;;  %3222 = vmatprep.subr.bf16.mxu1 %v4878_v0  ;;  %v4885_v48 = vand.u32 4294901760, %v3849_v19  ;;  %v4893_v19 = vand.u32 4294901760, %v3824_v52  ;;  %v4902_v52 = vand.u32 4294901760, %v4864_v23  ;;  %v4904_v23 = vand.u32 4294901760, %v3867_v39  ;;  %v1999_v39 = vld [vmem:[%s4633_s2 + $0x18] sm:$0xff] }
 0x115   : > { %3046 = vmatprep.subr.bf16.mxu0 %v4777_v31  ;;  %v4917_v30 = vand.u32 4294901760, %v3951_v13  ;;  %v4920_v13 = vand.u32 4294901760, %v4832_v3  ;;  %v4932_v3 = vld [vmem:[#allocation27_spill] sm:$0xff] }
 0x116   : > { %v3050_v9 = vpack.c.bf16 %v4885_v48, %v4884_v27  ;;  %v4894_v48 = vand.u32 4294901760, %v3835_v32  ;;  %v4896_v27 = vand.u32 4294901760, %v3859_v25  ;;  %v4903_v32 = vand.u32 4294901760, %v4867_v15  ;;  %v1998_v25 = vld [vmem:[%s4633_s2 + $0x10] sm:$0xff] }
 0x117   : > { %v4906_v15 = vand.u32 4294901760, %v4053_v29  ;;  %2016 = vperm.xlu1 %3391, %v1998_v25   ;;  %v2001_v29 = vld [vmem:[%s4633_s2 + $0x28] sm:$0xff]  ;;  %v4919_v25 = vand.u32 4294901760, %v4109_v47  ;;  %v3068_v47 = vpack.c.bf16 %v4921_v54, %v4920_v13 }
 0x118   : > { %v3053_v26 = vpack.c.bf16 %v4896_v27, %v4895_v7  ;;  %v4911_v7 = vand.u32 4294901760, %v4076_v17  ;;  %v4913_v17 = vand.u32 4294901760, %v3930_v12  ;;  %v2081_v12 = vld [vmem:[%s4634_s3 + $0x28] sm:$0xff] }
 0x119   : > { %v3249_v53 = vpack.c.bf16 %v4919_v25, %v4918_v51 }
 0x11b   : > { %3224 = vmatpush3.bf16.xpose.msra.mxu1 %v4878_v0  ;;  %2021 = vperm.xlu1 %3391, %v1999_v39  }
 0x11c   : > { %3048 = vmatpush3.bf16.xpose.msra.mxu0 %v4883_v45  ;;  %3226 = vmatprep.subr.bf16.mxu1 %v3225_v11 }
 0x11d   : > { %3049 = vmatprep.subr.bf16.mxu0 %v4777_v31 }
 0x11f   : > { %2031 = vperm.xlu1 %3391, %v2001_v29  }
 0x122   : > { %2854 = vmatmul.mubr.f32.vlgmr.msra.gmra.mrb[0].mxu1 %v4890_v56 }
 0x123   : > { %3228 = vmatpush3.bf16.xpose.msra.mxu1 %v3225_v11  ;;  %2617 = vmatmul.mubr.f32.vlgmr.msra.gmra.mrb[0].mxu0 %v4891_v2  ;;  %v4905_v11 = vand.u32 4294901760, %v3872_v22  ;;  %v1997_v2 = vld [vmem:[%s4633_s2 + $0x8] sm:$0xff]  ;;  %v2000_v22 = vld [vmem:[%s4633_s2 + $0x20] sm:$0xff] }
 0x124   : > { %3051 = vmatpush3.bf16.xpose.msra.mxu0 %v3050_v9  ;;  %3230 = vmatprep.subr.bf16.mxu1 %v3229_v1 }
 0x125   : > { %3052 = vmatprep.subr.bf16.mxu0 %v4777_v31  ;;  %2856 = vmatprep.mubr.f32.mxu1 %v4892_v33  ;;  %v3056_v9 = vpack.c.bf16 %v4905_v11, %v4904_v23  ;;  %v4909_v33 = vand.u32 4294901760, %v3892_v44  ;;  %v2077_v44 = vld [vmem:[%s4634_s3 + $0x8] sm:$0xff]  ;;  %v2082_v23 = vld [vmem:[%s4634_s3 + $0x30] sm:$0xff]  ;;  %v2083_v11 = vld [vmem:[%s4634_s3 + $0x38] sm:$0xff] }
 0x126   : > { %2857 = vmatmul.mubr.f32.gmra.mrb[2].mxu1 %v4893_v19  ;;  %2651 = vmatprep.mubr.msk.f32.mxu0 %vm3477_vm0, %v4835_v35 }
 0x127   : > { %2859 = vmatprep.mubr.f32.mxu1 %v4894_v48  ;;  %2011 = vperm.xlu0 %3390, %v1997_v2   ;;  %v4910_v48 = vand.u32 4294901760, %v4066_v14  ;;  %v4912_v14 = vand.u32 4294901760, %v3925_v40  ;;  %v2080_v40 = vld [vmem:[%s4634_s3 + $0x20] sm:$0xff] }
 0x128   : > { %2041 = vperm.xlu1 %3391, %v2003_v59  }
 0x129   : > { %v3241_v27 = vpack.c.bf16 %v4911_v7, %v4910_v48  ;;  %v3062_v60 = vpack.c.bf16 %v4913_v17, %v4912_v14 }
 0x12a   : > { %2860 = vmatmul.mubr.f32.gmra.mrb[4].mxu1 %v4901_v62  ;;  %v2078_v62 = vld [vmem:[%s4634_s3 + $0x10] sm:$0xff] }
 0x12b   : > { %3232 = vmatpush3.bf16.xpose.msra.mxu1 %v3229_v1  ;;  %2862 = vmatprep.mubr.f32.mxu1 %v4902_v52  ;;  %v4907_v1 = vand.u32 4294901760, %v4061_v10  ;;  %v4908_v10 = vand.u32 4294901760, %v3887_v43  ;;  %v2076_v43 = vld [vmem:[%s4634_s3] sm:$0xff]  ;;  %v2079_v52 = vld [vmem:[%s4634_s3 + $0x18] sm:$0xff] }
 0x12c   : > { %3054 = vmatpush3.bf16.xpose.msra.mxu0 %v3053_v26  ;;  %3234 = vmatprep.subr.bf16.mxu1 %v3233_v38  ;;  %v2002_v26 = vld [vmem:[%s4633_s2 + $0x30] sm:$0xff] }
 0x12d   : > { %3055 = vmatprep.subr.bf16.mxu0 %v4777_v31  ;;  %v3237_v56 = vpack.c.bf16 %v4907_v1, %v4906_v15  ;;  %v3059_v19 = vpack.c.bf16 %v4909_v33, %v4908_v10  ;;  %2026 = vperm.xlu0 %3390, %v2000_v22   ;;  %v4924_v1 = vand.u32 4294901760, %v4023_v57  ;;  %v4928_v57 = vld [vmem:[#allocation14_spill] sm:$0xff] }
 0x12e   : > { %2863 = vmatmul.mubr.f32.gmra.mrb[6].mxu1 %v4903_v32  ;;  %2091 = vperm.xlu1 %3391, %v2077_v44   ;;  %v3065_v32 = vpack.c.bf16 %v4917_v30, %v4916_v49 }
 0x12f   : > { %2897 = vmatprep.mubr.f32.mxu1 %v4843_v8 }
 0x131   : > { %2036 = vperm.xlu0 %3390, %v2002_v26  }
 0x132   : > { %2101 = vperm.xlu1 %3391, %v2079_v52  }
 0x133   : > { %3236 = vmatpush3.bf16.xpose.msra.mxu1 %v3233_v38  ;;  %v3245_v38 = vpack.c.bf16 %v4915_v58, %v4914_v61 }
 0x134   : > { %3057 = vmatpush3.bf16.xpose.msra.mxu0 %v3056_v9  ;;  %3238 = vmatprep.subr.bf16.mxu1 %v3237_v56  ;;  %v4923_v9 = vand.u32 4294901760, %v4142_v36  ;;  %v4931_v36 = vld [vmem:[#allocation24_spill] sm:$0xff] }
 0x135   : > { %3058 = vmatprep.subr.bf16.mxu0 %v4777_v31  ;;  %2086 = vperm.xlu0 %3390, %v2076_v43  }
 0x136   : > { %2111 = vperm.xlu1 %3391, %v2081_v12   ;;  %v3253_v15 = vpack.c.bf16 %v4923_v9, %v4922_v46 }
 0x139   : > { %2096 = vperm.xlu0 %3390, %v2078_v62  }
 0x13a   : > { %2121 = vperm.xlu1 %3391, %v2083_v11  }
 0x13b   : > { %3240 = vmatpush3.bf16.xpose.msra.mxu1 %v3237_v56  ;;  %v4925_v56 = vand.u32 4294901760, %v4026_v6  ;;  %v4929_v6 = vld [vmem:[#allocation15_spill] sm:$0xff] }
 0x13c   : > { %3060 = vmatpush3.bf16.xpose.msra.mxu0 %v3059_v19  ;;  %3242 = vmatprep.subr.bf16.mxu1 %v3241_v27 }
 0x13d   : > { %3061 = vmatprep.subr.bf16.mxu0 %v4777_v31  ;;  %2106 = vperm.xlu0 %3390, %v2080_v40   ;;  %v3071_v2 = vpack.c.bf16 %v4925_v56, %v4924_v1 }
 0x141   : > { %2116 = vperm.xlu0 %3390, %v2082_v23  }
 0x143   : > { %3244 = vmatpush3.bf16.xpose.msra.mxu1 %v3241_v27 }
 0x144   : > { %3063 = vmatpush3.bf16.xpose.msra.mxu0 %v3062_v60  ;;  %3246 = vmatprep.subr.bf16.mxu1 %v3245_v38 }
 0x145   : > { %3064 = vmatprep.subr.bf16.mxu0 %v4777_v31 }
 0x14b   : > { %3248 = vmatpush3.bf16.xpose.msra.mxu1 %v3245_v38 }
 0x14c   : > { %3066 = vmatpush3.bf16.xpose.msra.mxu0 %v3065_v32  ;;  %3250 = vmatprep.subr.bf16.mxu1 %v3249_v53 }
 0x14d   : > { %3067 = vmatprep.subr.bf16.mxu0 %v4777_v31 }
 0x153   : > { %3252 = vmatpush3.bf16.xpose.msra.mxu1 %v3249_v53 }
 0x154   : > { %3069 = vmatpush3.bf16.xpose.msra.mxu0 %v3068_v47  ;;  %3254 = vmatprep.subr.bf16.mxu1 %v3253_v15 }
 0x155   : > { %3070 = vmatprep.subr.bf16.mxu0 %v4777_v31 }
 0x15b   : > { %3256 = vmatpush3.bf16.xpose.msra.mxu1 %v3253_v15 }
 0x15c   : > { %3072 = vmatpush3.bf16.xpose.msra.mxu0 %v3071_v2  ;;  %3258 = vmatprep.subr.bf16.mxu1 %v4858_v20 }
 0x15d   : > { %3073 = vmatprep.subr.bf16.mxu0 %v4777_v31 }
 0x162   : > { %2898 = vmatmul.mubr.f32.vlgmr.msra.gmra.mrb[0].mxu1 %v4844_v41 }
 0x163   : > { %3260 = vmatpush3.bf16.xpose.msra.mxu1 %v4858_v20  ;;  %2652 = vmatmul.mubr.f32.vlgmr.msra.gmra.mrb[0].mxu0 %v4845_v16  ;;  %v4934_v20 = vld [vmem:[#allocation32_spill] sm:$0xff] }
 0x164   : > { %3075 = vmatpush3.bf16.xpose.msra.mxu0 %v4861_v4  ;;  %3262 = vmatprep.subr.bf16.mxu1 %v4862_v28 }
 0x165   : > { %3076 = vmatprep.subr.bf16.mxu0 %v4777_v31  ;;  %2900 = vmatprep.mubr.f32.mxu1 %v4847_v18 }
 0x166   : > { %2901 = vmatmul.mubr.f32.gmra.mrb[2].mxu1 %v4848_v37  ;;  %2686 = vmatprep.mubr.msk.f32.mxu0 %vm3477_vm0, %v4835_v35  ;;  %v4926_v35 = vld [vmem:[#allocation12_spill] sm:$0xff] }
 0x167   : > { %2903 = vmatprep.mubr.f32.mxu1 %v4849_v21 }
 0x16a   : > { %2904 = vmatmul.mubr.f32.gmra.mrb[4].mxu1 %v3827_v50 }
 0x16b   : > { %3264 = vmatpush3.bf16.xpose.msra.mxu1 %v4862_v28  ;;  %2906 = vmatprep.mubr.f32.mxu1 %v4069_v5 }
 0x16c   : > { %3078 = vmatpush3.bf16.xpose.msra.mxu0 %v4865_v63  ;;  %3266 = vmatprep.subr.bf16.mxu1 %v4866_v34 }
 0x16d   : > { %3079 = vmatprep.subr.bf16.mxu0 %v4777_v31 }
 0x16e   : > { %2907 = vmatmul.mubr.f32.gmra.mrb[6].mxu1 %v4098_v24 }
 0x16f   : > { %2941 = vmatprep.mubr.f32.mxu1 %v4843_v8  ;;  %v4933_v8 = vld [vmem:[#allocation28_spill] sm:$0xff] }
 0x173   : > { %3268 = vmatpush3.bf16.xpose.msra.mxu1 %v4866_v34 }
 0x174   : > { %3081 = vmatpush3.bf16.xpose.msra.mxu0 %v4926_v35  ;;  %3270 = vmatprep.subr.bf16.mxu1 %v4927_v55 }
 0x175   : > { %3082 = vmatprep.subr.bf16.mxu0 %v4777_v31 }
 0x17b   : > { %3272 = vmatpush3.bf16.xpose.msra.mxu1 %v4927_v55 }
 0x17c   : > { %3084 = vmatpush3.bf16.xpose.msra.mxu0 %v4928_v57  ;;  %3274 = vmatprep.subr.bf16.mxu1 %v4929_v6 }
 0x17d   : > { %3085 = vmatprep.subr.bf16.mxu0 %v4777_v31 }
 0x183   : > { %3276 = vmatpush3.bf16.xpose.msra.mxu1 %v4929_v6 }
 0x184   : > { %3087 = vmatpush3.bf16.xpose.msra.mxu0 %v4930_v42  ;;  %3278 = vmatprep.subr.bf16.mxu1 %v4931_v36 }
 0x185   : > { %3088 = vmatprep.subr.bf16.mxu0 %v4777_v31 }
 0x18b   : > { %3280 = vmatpush3.bf16.xpose.msra.mxu1 %v4931_v36 }
 0x18c   : > { %3090 = vmatpush3.bf16.xpose.msra.mxu0 %v4932_v3  ;;  %3282 = vmatprep.subr.bf16.mxu1 %v4933_v8 }
 0x18d   : > { %3091 = vmatprep.subr.bf16.mxu0 %v4777_v31 }
 0x193   : > { %3284 = vmatpush3.bf16.xpose.msra.mxu1 %v4933_v8 }
 0x194   : > { %3093 = vmatpush3.bf16.xpose.msra.mxu0 %v4934_v20  ;;  %3286 = vmatprep.subr.bf16.mxu1 %v4878_v0 }
 0x195   : > { %3094 = vmatprep.subr.bf16.mxu0 %v4777_v31  ;;  %v2007_v31 = vpop.permute.xlu0 %2006 }
 0x196   : > { %v2017_v4 = vpop.permute.xlu1 %2016 }
 0x19a   : > { %v2022_v34 = vpop.permute.xlu1 %2021 }
 0x19b   : > { %3288 = vmatpush3.bf16.xpose.msra.mxu1 %v4878_v0  ;;  %v978_v0 = vlaneseq }
 0x19c   : > { %3096 = vmatpush3.bf16.xpose.msra.mxu0 %v4883_v45 }
 0x19d   : > { %v979_v28 = vshrl.u32 %v978_v0, 7 }
 0x19e   : > { %v2032_v10 = vpop.permute.xlu1 %2031 }
 0x1a2   : > { %2942 = vmatmul.mubr.f32.vlgmr.msra.gmra.mrb[0].mxu1 %v4844_v41  ;;  %v980_v41 = vsub.s32 0, %v979_v28 }
 0x1a3   : > { %2687 = vmatmul.mubr.f32.vlgmr.msra.gmra.mrb[0].mxu0 %v4845_v16  ;;  %2944 = vmatprep.mubr.f32.mxu1 %v4847_v18 }
 0x1a6   : > { %2945 = vmatmul.mubr.f32.gmra.mrb[2].mxu1 %v4848_v37  ;;  %v2012_v63 = vpop.permute.xlu0 %2011 }
 0x1a7   : > { %2947 = vmatprep.mubr.f32.mxu1 %v4849_v21  ;;  %v2042_v52 = vpop.permute.xlu1 %2041 }
 0x1aa   : > { %2948 = vmatmul.mubr.f32.gmra.mrb[4].mxu1 %v3827_v50 }
 0x1ab   : > { %2950 = vmatprep.mubr.f32.mxu1 %v4069_v5 }
 0x1ac   : > { %v2027_v39 = vpop.permute.xlu0 %2026 }
 0x1ad   : > { %v2092_v15 = vpop.permute.xlu1 %2091 }
 0x1ae   : > { %2951 = vmatmul.mubr.f32.gmra.mrb[6].mxu1 %v4098_v24 }
 0x1b0   : > { %v2037_v27 = vpop.permute.xlu0 %2036 }
 0x1b1   : > { %v2102_v42 = vpop.permute.xlu1 %2101 }
 0x1b4   : > { %v2087_v23 = vpop.permute.xlu0 %2086 }
 0x1b8   : > { %v2097_v35 = vpop.permute.xlu0 %2096 }
 0x275   : > { %v2943_v16 = vpop.f32.mrb[0].mxu1 }
 0x276   : > { %v974_v45 = vpop.f32.mrb[0].mxu0  ;;  %v1950_v18 = vpop.f32.mrb[1].mxu1 }
 0x277   : > { %v981_v37 = vrot.slane %v974_v45, %v980_v41  ;;  %v2688_v22 = vpop.f32.mrb[1].mxu0 }
 0x279   : > { %v3289_v21 = vadd.f32 %v2943_v16, %v981_v37  ;;  %v3290_v29 = vadd.f32 %v1950_v18, %v981_v37  ;;  %v2946_v50 = vpop.f32.mrb[2].mxu1  ;;  %v2112_v16 = vpop.permute.xlu1 %2111 }
 0x27a   : > { %v3291_v5 = vadd.f32 %v2946_v50, %v981_v37  ;;  %v1962_v33 = vpop.f32.mrb[3].mxu1 }
 0x27b   : > { %v2044_v24 = vadd.f32 %v3290_v29, %v2007_v31  ;;  %v2045_v19 = vadd.f32 %v3289_v21, %v2012_v63  ;;  %v3292_v48 = vadd.f32 %v1962_v33, %v981_v37  ;;  %v2107_v31 = vpop.permute.xlu0 %2106 }
 0x27c   : > { %v2047_v7 = vadd.f32 %v3291_v5, %v2022_v34 }
 0x27d   : > { %v2052_v26 = vmin.f32 %v2044_v24, 0.0  ;;  %v2053_v59 = vmin.f32 %v2045_v19, 0.0  ;;  %v2046_v43 = vadd.f32 %v3292_v48, %v2017_v4  ;;  %v2949_v44 = vpop.f32.mrb[4].mxu1  ;;  %v2122_v5 = vpop.permute.xlu1 %2121 }
 0x27e   : > { %v2055_v14 = vmin.f32 %v2047_v7, 0.0  ;;  %v3293_v17 = vadd.f32 %v2949_v44, %v981_v37  ;;  %v1974_v60 = vpop.f32.mrb[5].mxu1 }
 0x27f   : > { %v2060_v61 = vmul.f32 1.442695, %v2052_v26  ;;  %v2062_v58 = vmul.f32 1.442695, %v2053_v59  ;;  %v2054_v38 = vmin.f32 %v2046_v43, 0.0  ;;  %v3294_v62 = vadd.f32 %v1974_v60, %v981_v37 }
 0x280   : > { %v2066_v40 = vmul.f32 1.442695, %v2055_v14  ;;  %v2049_v12 = vadd.f32 %v3293_v17, %v2032_v10 }
 0x281   : > { %3392 = vpow2.f32 %v2060_v61  ;;  %v2064_v49 = vmul.f32 1.442695, %v2054_v38  ;;  %v2048_v30 = vadd.f32 %v3294_v62, %v2027_v39  ;;  %v2952_v32 = vpop.f32.mrb[6].mxu1 }
 0x282   : > { %3394 = vpow2.f32 %v2062_v58  ;;  %v2057_v51 = vmin.f32 %v2049_v12, 0.0  ;;  %v3295_v25 = vadd.f32 %v2952_v32, %v981_v37  ;;  %v1986_v53 = vpop.f32.mrb[7].mxu1 }
 0x283   : > { %3396 = vpow2.f32 %v2066_v40  ;;  %v2056_v11 = vmin.f32 %v2048_v30, 0.0  ;;  %v3296_v13 = vadd.f32 %v1986_v53, %v981_v37  ;;  %v2117_v37 = vpop.permute.xlu0 %2116 }
 0x284   : > { %3398 = vpow2.f32 %v2064_v49  ;;  %v2070_v54 = vmul.f32 1.442695, %v2057_v51  ;;  %v2051_v47 = vadd.f32 %v3295_v25, %v2042_v52 }
 0x285   : > { %v2068_v46 = vmul.f32 1.442695, %v2056_v11  ;;  %v2050_v9 = vadd.f32 %v3296_v13, %v2037_v27 }
 0x286   : > { %v2059_v1 = vmin.f32 %v2051_v47, 0.0 }
 0x287   : > { %3400 = vpow2.f32 %v2068_v46  ;;  %v2058_v56 = vmin.f32 %v2050_v9, 0.0 }
 0x288   : > { %3402 = vpow2.f32 %v2070_v54  ;;  %v2074_v2 = vmul.f32 1.442695, %v2059_v1 }
 0x289   : > { %v2072_v55 = vmul.f32 1.442695, %v2058_v56 }
 0x28b   : > { %v3393_v57 = vpop.eup %3392  ;;  %3404 = vpow2.f32 %v2072_v55 }
 0x28c   : > { %v3395_v6 = vpop.eup %3394  ;;  %v2124_v36 = vmul.f32 %v3393_v57, %v2087_v23  ;;  %3406 = vpow2.f32 %v2074_v2 }
 0x28d   : > { %v3397_v3 = vpop.eup %3396  ;;  %v2125_v8 = vmul.f32 %v3395_v6, %v2092_v15 }
 0x28e   : > { %v3399_v20 = vpop.eup %3398  ;;  %v2127_v63 = vmul.f32 %v3397_v3, %v2102_v42 }
 0x28f   : > { %v2132_v0 = vadd.f32 %v2125_v8, %v2124_v36  ;;  %v2126_v4 = vmul.f32 %v3399_v20, %v2097_v35 }
 0x291   : > { %v3401_v28 = vpop.eup %3400  ;;  %v2133_v41 = vadd.f32 %v2132_v0, %v2126_v4 }
 0x292   : > { %v3403_v34 = vpop.eup %3402  ;;  %v2128_v45 = vmul.f32 %v3401_v28, %v2107_v31 }
 0x293   : > { %v2134_v18 = vadd.f32 %v2133_v41, %v2127_v63  ;;  %v2129_v22 = vmul.f32 %v3403_v34, %v2112_v16 }
 0x295   : > { %v3405_v39 = vpop.eup %3404  ;;  %v2135_v21 = vadd.f32 %v2134_v18, %v2128_v45 }
 0x296   : > { %v3407_v29 = vpop.eup %3406  ;;  %v2130_v50 = vmul.f32 %v3405_v39, %v2117_v37 }
 0x297   : > { %v2136_v10 = vadd.f32 %v2135_v21, %v2129_v22  ;;  %v2131_v33 = vmul.f32 %v3407_v29, %v2122_v5 }
 0x299   : > { %v2137_v24 = vadd.f32 %v2136_v10, %v2130_v50 }
 0x29b   : > { %v2138_v19 = vadd.f32 %v2137_v24, %v2131_v33 }
 0x29d   : > { %v2139_v48 = vrot.slane %v2138_v19, 4 }
 0x29f   : > { %v2140_v7 = vadd.f32 %v2139_v48, %v2138_v19 }
 0x2a1   : > { %v2141_v27 = vrot.slane %v2140_v7, 2 }
 0x2a3   : > { %v2142_v26 = vadd.f32 %v2141_v27, %v2140_v7 }
 0x2a5   : > { %v2143_v59 = vrot.slane %v2142_v26, 1 }
 0x2a7   : > { %v2144_v43 = vadd.f32 %v2143_v59, %v2142_v26 }
 0x2a9   : > { %v2146_v44 = vand.u32 2147483647, %v2144_v43  ;;  %v2145_v38 = vmax.f32 %v2144_v43, 0.0 }
 0x2ab   : > { %v2147_v14 = vsub.f32 0.0, %v2146_v44 }
 0x2ad   : > { %v2148_v17 = vmul.f32 1.442695, %v2147_v14 }
 0x2af   : > { %3408 = vpow2.f32 %v2148_v17 }
 0x2b9   : > { %v3409_v60 = vpop.eup %3408 }
 0x2ba   : > { %v2150_v61 = vadd.f32 1.0, %v3409_v60 }
 0x2bc   : > { %3410 = vlog2.f32 %v2150_v61 }
 0x2c6   : > { %v3411_v58 = vpop.eup %3410 }
 0x2c7   : > { %v2152_v62 = vmul.f32 0.6931472, %v3411_v58 }
 0x2c9   : > { %v2153_v52 = vadd.f32 %v2152_v62, %v2145_v38 }
 0x2cb   : > { %v2154_v40 = vadd.f32 0.0001, %v2153_v52 }
 0x2cd   : > { %2155 = vst [vmem:[%s229_s14] sm:$0x1] %v2154_v40 }
 0x2ce   : > { %3425 = shalt.err (!%p3422_p3)
}
 0x2cf   : > { %s3426_s30 = scalar_lea.hbm %s4589_s22, 16  ;;  %s3430_s11 = scalar_lea.hbm %s4636_s5, 32 }
 0x2d0   : > { %p3427_p4 = scmp.ne.s32.totalorder %s4589_s22, %s3426_s30  ;;  %p3431_p9 = scmp.lt.u32.totalorder %s4589_s22, %s4636_s5 }
 0x2d1   : > { %p3432_p10 = scmp.lt.u32.totalorder %s3430_s11, %s3426_s30  ;;  %p3434_p12 = scmp.lt.u32.totalorder %s3426_s30, %s4589_s22 }
 0x2d2   : > { %p3428_p7 = pnand %p3427_p4, %p3546_p5 }
 0x2d3   : > { %p3433_p11 = por %p3432_p10, %p3431_p9 }
 0x2d4   : > { %p3429_p8 = pneg %p3428_p7 }
 0x2d5   : > { %p3435_p13 = por %p3434_p12, %p3433_p11 }
 0x2d7   : > { %p3436_p0 = pnand %p3435_p13, %p3429_p8 }
 0x2d9   : > { %3439 = shalt.err (!%p3436_p0)
}
 0x2da   : > { %3347 = dma.vmem_to_hbm [thread:$0]  (%p3546_p5), %s4591_s15, 16, %s4589_s22, %s2157_s23  }
 0x2db PF: > { %p3353_p1 = scmp.ge.s32.totalorder %s3474_s21, 2  ;;  %s2181_s13 = sand.u32 1, %s3462_s18  }
 0x2dc   : > { %s2182_s14 = scalar_lea.sflag [#allocation3], %s2181_s13 }
 0x2dd   : > { %p3350_p2 = pnand %p3353_p1, %p3550_p6 }
 0x2df   : > { %3457 = dma.done.wait (!%p3350_p2), %s2182_s14, 16  }
 0x2e0   : > { %3459 = vsyncadd (!%p3350_p2), %s2182_s14, 4294967280  ;;  %p15_p3 = scmp.ge.s32.totalorder %s3534_s24, 4   ;;  %s4935_s18 = smov %s3466_s19 }
 0x2e1   : > { %s4936_s19 = smov %s3470_s20  ;;  %s4937_s20 = smov %s3544_s27 }
 0x2e2   : > { %s4938_s21 = smov %s3534_s24  ;;  %17 = sbr.rel (!%p15_p3) target bundleno = 3 (0x3), region = 75 }
 0x2e9   :  { %2186 = vsyncpa [#allocation3], 1 }
 0x2ea   :  { %2188 = vsyncpa [#allocation3 + $0x1], 1 }

</bundles_post_ra>
